<compile_context>
chip_gen: v6e
topology: v6e:2x2x1
jax: 0.10.0
libtpu: 0.0.40
codegen_flags: <defaults>
</compile_context>

<pallas_src>
import numpy as np
import jax
import jax.numpy as jnp
from jax import lax
from jax.experimental import pallas as pl
from jax.experimental.pallas import tpu as pltpu

# ---- module-consistent shapes ---------------------------------------------
B = 2            # batch
S = 8            # sequence length
BS = B * S       # batch folded into the sublane axis
D = 32           # hidden_size
H = 4            # num_attention_heads
HD = D // H      # head_dim
A = 32           # act_proc_resid_dim (input dim of c_attn_kv)
INNER = 4 * D    # n_inner (GPT2MLP)
EPS = 1e-5       # layer_norm_epsilon
SCALE = float(1.0 / np.sqrt(HD))
NEG_INF = float(jnp.finfo(jnp.float32).min)
LANE = 128

# Unpacked (PyTorch-convention) parameter shapes: Conv1D does y = x @ W + b
# with W of shape (in, out).
PARAM_SHAPES = [
    ("ln1_g", (1, D)), ("ln1_b", (1, D)),
    ("cattn_w", (D, 3 * D)), ("cattn_b", (1, 3 * D)),
    ("cproj_w", (D, D)), ("cproj_b", (1, D)),
    ("lnx_g", (1, D)), ("lnx_b", (1, D)),
    ("cq_w", (D, D)), ("cq_b", (1, D)),
    ("ckv_w", (A, 2 * D)), ("ckv_b", (1, 2 * D)),
    ("nok", (H, HD)), ("nov", (H, HD)),
    ("cproj2_w", (D, D)), ("cproj2_b", (1, D)),
    ("ln2_g", (1, D)), ("ln2_b", (1, D)),
    ("fc_w", (D, INNER)), ("fc_b", (1, INNER)),
    ("mproj_w", (INNER, D)), ("mproj_b", (1, D)),
]

# 128-lane-aligned segments of the packed weight slab.  The slab has D weight
# rows plus one extra sublane row (row D) holding each segment's bias, so the
# fused projections can add their packed bias in a single VPU add.
(SEG_WQ, SEG_WK, SEG_WV, SEG_CKV_K, SEG_CKV_V, SEG_CQ, SEG_CPROJ,
 SEG_CPROJ2, SEG_FC, SEG_HMAT) = range(10)
N_WSEG = 10

# Rows of the packed (N_VEC_ROWS, 128) table of per-channel vectors and baked
# static masks.  HMATT rows double as per-head indicator masks and as the
# (4, 32) expansion matrix for the collapsed cross-attention.
R_LN1_G, R_LN1_B, R_LNX_G, R_LNX_B, R_LN2_G, R_LN2_B, R_NOK, R_NOV = range(8)
R_HMATT = 8          # rows 8..11  : head-indicator rows (4, D)
R_MPROJ_B = 12       # row 12      : mproj bias
R_MASK = 16          # rows 16..31 : additive causal/batch-block mask (BS, BS)
R_SEL = 32           # rows 32..47 : batch selector Sel (BS, B)
N_VEC_ROWS = 48


# ---------------- host-side one-time parameter packing ---------------------
def pack_params(p):
    """Packs the 22 small parameter arrays + static masks into 3 kernel inputs."""
    def nparr(a):
        return np.asarray(a, dtype=np.float32)

    # Head-indicator matrix: Hmat[d, h] = 1 iff feature d belongs to head h.
    hmat = np.zeros((D, H), np.float32)
    for d in range(D):
        hmat[d, d // HD] = 1.0

    wslab = np.zeros((D + 1, N_WSEG * LANE), np.float32)

    def put(seg, w, b=None):
        w = nparr(w)
        wslab[:w.shape[0], seg * LANE: seg * LANE + w.shape[1]] = w
        if b is not None:
            b = nparr(b).reshape(-1)
            wslab[D, seg * LANE: seg * LANE + b.shape[0]] = b

    cattn_w, cattn_b = nparr(p["cattn_w"]), nparr(p["cattn_b"])
    put(SEG_WQ, cattn_w[:, 0 * D:1 * D], cattn_b[0, 0 * D:1 * D])
    put(SEG_WK, cattn_w[:, 1 * D:2 * D], cattn_b[0, 1 * D:2 * D])
    put(SEG_WV, cattn_w[:, 2 * D:3 * D], cattn_b[0, 2 * D:3 * D])
    ckv_w, ckv_b = nparr(p["ckv_w"]), nparr(p["ckv_b"])
    put(SEG_CKV_K, ckv_w[:, :D], ckv_b[0, :D])
    put(SEG_CKV_V, ckv_w[:, D:], ckv_b[0, D:])
    put(SEG_CQ, p["cq_w"], p["cq_b"][0])
    put(SEG_CPROJ, p["cproj_w"], p["cproj_b"][0])
    put(SEG_CPROJ2, p["cproj2_w"], p["cproj2_b"][0])
    put(SEG_FC, p["fc_w"], p["fc_b"][0])
    put(SEG_HMAT, hmat)                     # no bias

    vecs = np.zeros((N_VEC_ROWS, LANE), np.float32)
    vecs[R_LN1_G, :D] = nparr(p["ln1_g"])[0]
    vecs[R_LN1_B, :D] = nparr(p["ln1_b"])[0]
    vecs[R_LNX_G, :D] = nparr(p["lnx_g"])[0]
    vecs[R_LNX_B, :D] = nparr(p["lnx_b"])[0]
    vecs[R_LN2_G, :D] = nparr(p["ln2_g"])[0]
    vecs[R_LN2_B, :D] = nparr(p["ln2_b"])[0]
    vecs[R_NOK, :D] = nparr(p["nok"]).reshape(-1)   # head-major (H*HD,)
    vecs[R_NOV, :D] = nparr(p["nov"]).reshape(-1)
    vecs[R_HMATT:R_HMATT + H, :D] = hmat.T          # (H, D) indicator rows
    vecs[R_MPROJ_B, :D] = nparr(p["mproj_b"])[0]

    # Additive causal + batch-block mask over the flattened (BS, BS) scores.
    rr, cc = np.meshgrid(np.arange(BS), np.arange(BS), indexing="ij")
    valid = (rr // S == cc // S) & (cc <= rr)
    vecs[R_MASK:R_MASK + BS, :BS] = np.where(valid, 0.0, NEG_INF)

    # Batch-broadcast selector: Sel[r, b] = 1 iff row r belongs to batch b.
    sel = (np.arange(BS)[:, None] // S == np.arange(B)[None, :])
    vecs[R_SEL:R_SEL + BS, :B] = sel.astype(np.float32)

    return {"vecs": jnp.asarray(vecs), "wslab": jnp.asarray(wslab),
            "wout": jnp.asarray(p["mproj_w"], dtype=jnp.float32)}


# ---------------- kernel-side helpers ---------------------------------------
def _layernorm(x, g, b):
    # One-pass form: breaks the mu -> (x-mu)^2 serial dependency.
    n = x.shape[-1]
    s1 = jnp.sum(x, axis=-1, keepdims=True)
    s2 = jnp.sum(x * x, axis=-1, keepdims=True)
    mu = s1 * (1.0 / n)
    var = s2 * (1.0 / n) - mu * mu
    return (x - mu) * lax.rsqrt(var + EPS) * g + b


def _gelu_new(x):
    c = float(np.sqrt(2.0 / np.pi))
    return 0.5 * x * (1.0 + jnp.tanh(c * (x + 0.044715 * x * x * x)))


def _recip(d):
    # EUP approximate reciprocal + one Newton step (rel err ~1e-7, keeps the
    # <1e-4 parity gate while moving the divide off the VPU critical path).
    r = pl.reciprocal(d, approx=True)
    return r * (2.0 - d * r)


def block_kernel(x_ref, act_ref, vec_ref, wslab_ref, wout_ref, out_ref):
    x = x_ref[...]          # (B*S, D)  batch folded into rows
    act = act_ref[...]      # (B, A)

    def vrow(row, width=D):                 # (1, width) packed vector row
        return vec_ref[row:row + 1, 0:width]

    def wseg(seg, width=D):                 # (D, width) weight, lane-aligned
        return wslab_ref[0:D, seg * LANE: seg * LANE + width]

    def bseg(seg, width=D):                 # (1, width) matching bias row
        return wslab_ref[D:D + 1, seg * LANE: seg * LANE + width]

    def matmul(a, w):
        return jnp.dot(a, w, preferred_element_type=jnp.float32)

    # ---------------- causal self-attention (AttnActGPT2Attention) ---------
    h = _layernorm(x, vrow(R_LN1_G), vrow(R_LN1_B))
    # Fused q/k/v projection: one MXU pass over 3 lane-aligned segments.
    qkv = matmul(h, wslab_ref[0:D, 0:3 * LANE]) + wslab_ref[D:D + 1, 0:3 * LANE]
    q = qkv[:, SEG_WQ * LANE: SEG_WQ * LANE + D]
    k = qkv[:, SEG_WK * LANE: SEG_WK * LANE + D]
    v = qkv[:, SEG_WV * LANE: SEG_WV * LANE + D]

    madd = vec_ref[R_MASK:R_MASK + BS, 0:BS]   # baked additive causal mask

    attn = jnp.zeros((BS, D), jnp.float32)
    for hh in range(H):  # static unroll; masked heads (no lane slicing/concat)
        mh = vrow(R_HMATT + hh)                              # baked (1, D) mask
        s = lax.dot_general(q, k * mh, (((1,), (1,)), ((), ())),
                            preferred_element_type=jnp.float32) * SCALE + madd
        s = s - jnp.max(s, axis=-1, keepdims=True)
        e = jnp.exp(s)
        p = e * _recip(jnp.sum(e, axis=-1, keepdims=True))
        attn = attn + matmul(p, v * mh)      # only head-hh columns are nonzero
    attn = matmul(attn, wseg(SEG_CPROJ)) + bseg(SEG_CPROJ)
    h1 = attn + x

    # ---------- cross attention to activation (CrossAttnActGPT2Attention) --
    h2 = _layernorm(h1, vrow(R_LNX_G), vrow(R_LNX_B))
    q2 = matmul(h2, wseg(SEG_CQ)) + bseg(SEG_CQ)

    # Fused K/V projection for the activation: one (2, 256) MXU pass.
    kv2 = (matmul(act, wslab_ref[0:D, SEG_CKV_K * LANE:(SEG_CKV_V + 1) * LANE])
           + wslab_ref[D:D + 1, SEG_CKV_K * LANE:(SEG_CKV_V + 1) * LANE])
    # Batch broadcast via one selector matmul (no where-chain / gather).
    sel = vec_ref[R_SEL:R_SEL + BS, 0:B]                     # (BS, B) baked
    kv2r = matmul(sel, kv2)                                  # (BS, 256)
    k2r = kv2r[:, 0:D]                                       # lanes [0:32]
    v2r = kv2r[:, LANE:LANE + D]                             # lanes [128:160]

    nok = vrow(R_NOK)                      # (1, D) learned no-op key (head-major)
    nov = vrow(R_NOV)                      # (1, D) learned no-op value
    hmat = wseg(SEG_HMAT, H)               # (D, H) head-indicator columns
    hmatT = vec_ref[R_HMATT:R_HMATT + H, 0:D]                # (H, D)

    # Collapsed per-head 2-key softmax: per-head scores via indicator matmuls.
    s0 = matmul(q2 * nok, hmat)            # (BS, H): <q2_h, nok_h>
    s1 = matmul(q2 * k2r, hmat)            # (BS, H): <q2_h, k2_h>
    m = jnp.maximum(s0, s1)
    e0 = jnp.exp(s0 - m)
    e1 = jnp.exp(s1 - m)
    inv = _recip(e0 + e1)
    w0x = matmul(e0 * inv, hmatT)          # (BS, D): no-op weight per feature
    w1x = 1.0 - w0x                        # two softmax weights sum to 1
    cross = w0x * nov + w1x * v2r
    cross = matmul(cross, wseg(SEG_CPROJ2)) + bseg(SEG_CPROJ2)
    h3 = cross + h1

    # ---------------- GPT2 MLP (gelu_new) ----------------------------------
    h4 = _layernorm(h3, vrow(R_LN2_G), vrow(R_LN2_B))
    a = matmul(h4, wseg(SEG_FC, INNER)) + bseg(SEG_FC, INNER)
    ff = matmul(_gelu_new(a), wout_ref[...]) + vrow(R_MPROJ_B)
    out_ref[...] = (h3 + ff).astype(out_ref.dtype)


# ---------------- wrapper ----------------------------------------------------
def cross_attn_act_block(x, act, packed):
    """x: (B, S, D) f32, act: (B, A) f32, packed: output of pack_params()."""
    x_flat = x.reshape(BS, D)
    vmem = pl.BlockSpec(memory_space=pltpu.MemorySpace.VMEM)
    out_flat = pl.pallas_call(
        block_kernel,
        out_shape=jax.ShapeDtypeStruct((BS, D), jnp.float32),
        in_specs=[vmem] * 5,
        out_specs=vmem,
    )(x_flat, act, packed["vecs"], packed["wslab"], packed["wout"])
    return out_flat.reshape(B, S, D)


# ---------------- pure-JAX reference (for verification) ---------------------
def ref_forward(x, act, p):
    def ln(h, g, b):
        mu = h.mean(-1, keepdims=True)
        var = ((h - mu) ** 2).mean(-1, keepdims=True)
        return (h - mu) / jnp.sqrt(var + EPS) * g + b

    def split_heads(t):
        return t.reshape(t.shape[0], -1, H, HD).transpose(0, 2, 1, 3)

    def merge_heads(t):
        return t.transpose(0, 2, 1, 3).reshape(t.shape[0], -1, D)

    res = x
    h = ln(x, p["ln1_g"][0], p["ln1_b"][0])
    qkv = h @ p["cattn_w"] + p["cattn_b"][0]
    q, k, v = jnp.split(qkv, 3, axis=-1)
    q, k, v = split_heads(q), split_heads(k), split_heads(v)
    s = jnp.einsum("bhqd,bhkd->bhqk", q, k) / jnp.sqrt(jnp.float32(HD))
    mask = jnp.tril(jnp.ones((S, S), bool))
    s = jnp.where(mask, s, jnp.finfo(jnp.float32).min)
    o = jnp.einsum("bhqk,bhkd->bhqd", jax.nn.softmax(s, -1), v)
    o = merge_heads(o) @ p["cproj_w"] + p["cproj_b"][0]
    h1 = o + res

    h2 = ln(h1, p["lnx_g"][0], p["lnx_b"][0])
    q2 = split_heads(h2 @ p["cq_w"] + p["cq_b"][0])
    kv = act[:, None, :] @ p["ckv_w"] + p["ckv_b"][0]          # (B, 1, 2D)
    k2, v2 = jnp.split(kv, 2, axis=-1)
    k2 = k2.reshape(B, 1, H, HD).transpose(0, 2, 1, 3)
    v2 = v2.reshape(B, 1, H, HD).transpose(0, 2, 1, 3)
    nok = jnp.broadcast_to(p["nok"][None, :, None, :], (B, H, 1, HD))
    nov = jnp.broadcast_to(p["nov"][None, :, None, :], (B, H, 1, HD))
    k2 = jnp.concatenate([nok, k2], axis=2)
    v2 = jnp.concatenate([nov, v2], axis=2)
    s2 = jnp.einsum("bhqd,bhkd->bhqk", q2, k2)
    o2 = jnp.einsum("bhqk,bhkd->bhqd", jax.nn.softmax(s2, -1), v2)
    o2 = merge_heads(o2) @ p["cproj2_w"] + p["cproj2_b"][0]
    h3 = o2 + h1

    h4 = ln(h3, p["ln2_g"][0], p["ln2_b"][0])
    a = h4 @ p["fc_w"] + p["fc_b"][0]
    g = 0.5 * a * (1.0 + jnp.tanh(np.sqrt(2.0 / np.pi) * (a + 0.044715 * a ** 3)))
    ff = g @ p["mproj_w"] + p["mproj_b"][0]
    return h3 + ff


def make_params(key):
    keys = jax.random.split(key, len(PARAM_SHAPES))
    params = {}
    for (name, shape), k in zip(PARAM_SHAPES, keys):
        w = 0.02 * jax.random.normal(k, shape, jnp.float32)
        if name.endswith("_g"):        # layernorm gains around 1.0
            w = w + 1.0
        params[name] = w
    return params


if __name__ == "__main__":
    key = jax.random.PRNGKey(0)
    kx, ka, kp = jax.random.split(key, 3)
    x = jax.random.normal(kx, (B, S, D), jnp.float32)
    act = jax.random.normal(ka, (B, A), jnp.float32)
    params = make_params(kp)
    packed = pack_params(params)     # one-time host-side packing (not per call)

    out = cross_attn_act_block(x, act, packed)
    out = jax.block_until_ready(out)

    ref = ref_forward(x, act, params)
    err = float(jnp.max(jnp.abs(out - ref)))
    assert out.shape == (B, S, D)
    assert err < 1e-4, f"max abs error vs reference: {err}"
    print("KERNEL_OK")
</pallas_src>

<mosaic_0001>
module attributes {stable_mosaic.version = 11 : i64} {
  func.func @block_kernel(%arg0: memref<16x32xf32, #tpu.memory_space<vmem>>, %arg1: memref<2x32xf32, #tpu.memory_space<vmem>>, %arg2: memref<48x128xf32, #tpu.memory_space<vmem>>, %arg3: memref<33x1280xf32, #tpu.memory_space<vmem>>, %arg4: memref<128x32xf32, #tpu.memory_space<vmem>>, %arg5: memref<16x32xf32, #tpu.memory_space<vmem>>) attributes {dimension_semantics = [], scalar_prefetch = 0 : i64, scratch_operands = 0 : i64, tpu.core_type = #tpu.core_type<tc>} {
    %c0 = arith.constant 0 : index
    %c0_0 = arith.constant 0 : index
    %0 = vector.load %arg0[%c0, %c0_0] : memref<16x32xf32, #tpu.memory_space<vmem>>, vector<16x32xf32>
    %c0_1 = arith.constant 0 : index
    %c0_2 = arith.constant 0 : index
    %1 = vector.load %arg1[%c0_1, %c0_2] : memref<2x32xf32, #tpu.memory_space<vmem>>, vector<2x32xf32>
    %c0_3 = arith.constant 0 : index
    %c0_4 = arith.constant 0 : index
    %2 = vector.load %arg2[%c0_3, %c0_4] : memref<48x128xf32, #tpu.memory_space<vmem>>, vector<1x32xf32>
    %c1 = arith.constant 1 : index
    %c0_5 = arith.constant 0 : index
    %3 = vector.load %arg2[%c1, %c0_5] : memref<48x128xf32, #tpu.memory_space<vmem>>, vector<1x32xf32>
    %cst = arith.constant dense<0.000000e+00> : vector<16xf32>
    %4 = vector.multi_reduction <add>, %0, %cst [1] : vector<16x32xf32> to vector<16xf32>
    %5 = vector.shape_cast %4 : vector<16xf32> to vector<16x1xf32>
    %6 = arith.mulf %0, %0 : vector<16x32xf32>
    %cst_6 = arith.constant dense<0.000000e+00> : vector<16xf32>
    %7 = vector.multi_reduction <add>, %6, %cst_6 [1] : vector<16x32xf32> to vector<16xf32>
    %8 = vector.shape_cast %7 : vector<16xf32> to vector<16x1xf32>
    %cst_7 = arith.constant 3.125000e-02 : f32
    %9 = vector.broadcast %cst_7 : f32 to vector<16x1xf32>
    %10 = arith.mulf %5, %9 : vector<16x1xf32>
    %cst_8 = arith.constant 3.125000e-02 : f32
    %11 = vector.broadcast %cst_8 : f32 to vector<16x1xf32>
    %12 = arith.mulf %8, %11 : vector<16x1xf32>
    %13 = arith.mulf %10, %10 : vector<16x1xf32>
    %14 = arith.subf %12, %13 : vector<16x1xf32>
    %15 = vector.broadcast %10 : vector<16x1xf32> to vector<16x32xf32>
    %16 = arith.subf %0, %15 : vector<16x32xf32>
    %cst_9 = arith.constant 9.99999974E-6 : f32
    %17 = vector.broadcast %cst_9 : f32 to vector<16x1xf32>
    %18 = arith.addf %14, %17 : vector<16x1xf32>
    %19 = math.rsqrt %18 : vector<16x1xf32>
    %20 = vector.broadcast %19 : vector<16x1xf32> to vector<16x32xf32>
    %21 = arith.mulf %16, %20 : vector<16x32xf32>
    %22 = vector.broadcast %2 : vector<1x32xf32> to vector<16x32xf32>
    %23 = arith.mulf %21, %22 : vector<16x32xf32>
    %24 = vector.broadcast %3 : vector<1x32xf32> to vector<16x32xf32>
    %25 = arith.addf %23, %24 : vector<16x32xf32>
    %c0_10 = arith.constant 0 : index
    %c0_11 = arith.constant 0 : index
    %26 = vector.load %arg3[%c0_10, %c0_11] : memref<33x1280xf32, #tpu.memory_space<vmem>>, vector<32x384xf32>
    %cst_12 = arith.constant dense<0.000000e+00> : vector<16x384xf32>
    %27 = tpu.matmul %25, %26, %cst_12 {dimension_numbers = #tpu.dot_dimension_numbers<[1], [0], [0], [1], [0, 0, 1, 1], [], []>} : vector<16x32xf32>, vector<32x384xf32>, vector<16x384xf32> -> vector<16x384xf32>
    %c32 = arith.constant 32 : index
    %c0_13 = arith.constant 0 : index
    %28 = vector.load %arg3[%c32, %c0_13] : memref<33x1280xf32, #tpu.memory_space<vmem>>, vector<1x384xf32>
    %29 = vector.broadcast %28 : vector<1x384xf32> to vector<16x384xf32>
    %30 = arith.addf %27, %29 : vector<16x384xf32>
    %31 = vector.extract_strided_slice %30 {offsets = [0, 0], sizes = [16, 32], strides = [1, 1]} : vector<16x384xf32> to vector<16x32xf32>
    %32 = vector.extract_strided_slice %30 {offsets = [0, 128], sizes = [16, 32], strides = [1, 1]} : vector<16x384xf32> to vector<16x32xf32>
    %33 = vector.extract_strided_slice %30 {offsets = [0, 256], sizes = [16, 32], strides = [1, 1]} : vector<16x384xf32> to vector<16x32xf32>
    %c16 = arith.constant 16 : index
    %c0_14 = arith.constant 0 : index
    %34 = vector.load %arg2[%c16, %c0_14] : memref<48x128xf32, #tpu.memory_space<vmem>>, vector<16x16xf32>
    %cst_15 = arith.constant 0.000000e+00 : f32
    %35 = vector.broadcast %cst_15 : f32 to vector<16x32xf32>
    %c8 = arith.constant 8 : index
    %c0_16 = arith.constant 0 : index
    %36 = vector.load %arg2[%c8, %c0_16] : memref<48x128xf32, #tpu.memory_space<vmem>>, vector<1x32xf32>
    %37 = vector.broadcast %36 : vector<1x32xf32> to vector<16x32xf32>
    %38 = arith.mulf %32, %37 : vector<16x32xf32>
    %cst_17 = arith.constant dense<0.000000e+00> : vector<16x16xf32>
    %39 = tpu.matmul %31, %38, %cst_17 {dimension_numbers = #tpu.dot_dimension_numbers<[1], [1], [0], [0], [0, 0, 1, 0], [], []>} : vector<16x32xf32>, vector<16x32xf32>, vector<16x16xf32> -> vector<16x16xf32>
    %cst_18 = arith.constant 0.353553385 : f32
    %40 = vector.broadcast %cst_18 : f32 to vector<16x16xf32>
    %41 = arith.mulf %39, %40 : vector<16x16xf32>
    %42 = arith.addf %41, %34 : vector<16x16xf32>
    %cst_19 = arith.constant dense<0xFF800000> : vector<16xf32>
    %43 = vector.multi_reduction <maximumf>, %42, %cst_19 [1] : vector<16x16xf32> to vector<16xf32>
    %44 = vector.shape_cast %43 : vector<16xf32> to vector<16x1xf32>
    %45 = vector.broadcast %44 : vector<16x1xf32> to vector<16x16xf32>
    %46 = arith.subf %42, %45 : vector<16x16xf32>
    %47 = math.exp %46 : vector<16x16xf32>
    %cst_20 = arith.constant dense<0.000000e+00> : vector<16xf32>
    %48 = vector.multi_reduction <add>, %47, %cst_20 [1] : vector<16x16xf32> to vector<16xf32>
    %49 = vector.shape_cast %48 : vector<16xf32> to vector<16x1xf32>
    %50 = tpu.reciprocal %49 {approx = true} : vector<16x1xf32> -> vector<16x1xf32>
    %51 = arith.mulf %49, %50 : vector<16x1xf32>
    %cst_21 = arith.constant 2.000000e+00 : f32
    %52 = vector.broadcast %cst_21 : f32 to vector<16x1xf32>
    %53 = arith.subf %52, %51 : vector<16x1xf32>
    %54 = arith.mulf %50, %53 : vector<16x1xf32>
    %55 = vector.broadcast %54 : vector<16x1xf32> to vector<16x16xf32>
    %56 = arith.mulf %47, %55 : vector<16x16xf32>
    %57 = vector.broadcast %36 : vector<1x32xf32> to vector<16x32xf32>
    %58 = arith.mulf %33, %57 : vector<16x32xf32>
    %cst_22 = arith.constant dense<0.000000e+00> : vector<16x32xf32>
    %59 = tpu.matmul %56, %58, %cst_22 {dimension_numbers = #tpu.dot_dimension_numbers<[1], [0], [0], [1], [0, 0, 1, 1], [], []>} : vector<16x16xf32>, vector<16x32xf32>, vector<16x32xf32> -> vector<16x32xf32>
    %60 = arith.addf %35, %59 : vector<16x32xf32>
    %c9 = arith.constant 9 : index
    %c0_23 = arith.constant 0 : index
    %61 = vector.load %arg2[%c9, %c0_23] : memref<48x128xf32, #tpu.memory_space<vmem>>, vector<1x32xf32>
    %62 = vector.broadcast %61 : vector<1x32xf32> to vector<16x32xf32>
    %63 = arith.mulf %32, %62 : vector<16x32xf32>
    %cst_24 = arith.constant dense<0.000000e+00> : vector<16x16xf32>
    %64 = tpu.matmul %31, %63, %cst_24 {dimension_numbers = #tpu.dot_dimension_numbers<[1], [1], [0], [0], [0, 0, 1, 0], [], []>} : vector<16x32xf32>, vector<16x32xf32>, vector<16x16xf32> -> vector<16x16xf32>
    %cst_25 = arith.constant 0.353553385 : f32
    %65 = vector.broadcast %cst_25 : f32 to vector<16x16xf32>
    %66 = arith.mulf %64, %65 : vector<16x16xf32>
    %67 = arith.addf %66, %34 : vector<16x16xf32>
    %cst_26 = arith.constant dense<0xFF800000> : vector<16xf32>
    %68 = vector.multi_reduction <maximumf>, %67, %cst_26 [1] : vector<16x16xf32> to vector<16xf32>
    %69 = vector.shape_cast %68 : vector<16xf32> to vector<16x1xf32>
    %70 = vector.broadcast %69 : vector<16x1xf32> to vector<16x16xf32>
    %71 = arith.subf %67, %70 : vector<16x16xf32>
    %72 = math.exp %71 : vector<16x16xf32>
    %cst_27 = arith.constant dense<0.000000e+00> : vector<16xf32>
    %73 = vector.multi_reduction <add>, %72, %cst_27 [1] : vector<16x16xf32> to vector<16xf32>
    %74 = vector.shape_cast %73 : vector<16xf32> to vector<16x1xf32>
    %75 = tpu.reciprocal %74 {approx = true} : vector<16x1xf32> -> vector<16x1xf32>
    %76 = arith.mulf %74, %75 : vector<16x1xf32>
    %cst_28 = arith.constant 2.000000e+00 : f32
    %77 = vector.broadcast %cst_28 : f32 to vector<16x1xf32>
    %78 = arith.subf %77, %76 : vector<16x1xf32>
    %79 = arith.mulf %75, %78 : vector<16x1xf32>
    %80 = vector.broadcast %79 : vector<16x1xf32> to vector<16x16xf32>
    %81 = arith.mulf %72, %80 : vector<16x16xf32>
    %82 = vector.broadcast %61 : vector<1x32xf32> to vector<16x32xf32>
    %83 = arith.mulf %33, %82 : vector<16x32xf32>
    %cst_29 = arith.constant dense<0.000000e+00> : vector<16x32xf32>
    %84 = tpu.matmul %81, %83, %cst_29 {dimension_numbers = #tpu.dot_dimension_numbers<[1], [0], [0], [1], [0, 0, 1, 1], [], []>} : vector<16x16xf32>, vector<16x32xf32>, vector<16x32xf32> -> vector<16x32xf32>
    %85 = arith.addf %60, %84 : vector<16x32xf32>
    %c10 = arith.constant 10 : index
    %c0_30 = arith.constant 0 : index
    %86 = vector.load %arg2[%c10, %c0_30] : memref<48x128xf32, #tpu.memory_space<vmem>>, vector<1x32xf32>
    %87 = vector.broadcast %86 : vector<1x32xf32> to vector<16x32xf32>
    %88 = arith.mulf %32, %87 : vector<16x32xf32>
    %cst_31 = arith.constant dense<0.000000e+00> : vector<16x16xf32>
    %89 = tpu.matmul %31, %88, %cst_31 {dimension_numbers = #tpu.dot_dimension_numbers<[1], [1], [0], [0], [0, 0, 1, 0], [], []>} : vector<16x32xf32>, vector<16x32xf32>, vector<16x16xf32> -> vector<16x16xf32>
    %cst_32 = arith.constant 0.353553385 : f32
    %90 = vector.broadcast %cst_32 : f32 to vector<16x16xf32>
    %91 = arith.mulf %89, %90 : vector<16x16xf32>
    %92 = arith.addf %91, %34 : vector<16x16xf32>
    %cst_33 = arith.constant dense<0xFF800000> : vector<16xf32>
    %93 = vector.multi_reduction <maximumf>, %92, %cst_33 [1] : vector<16x16xf32> to vector<16xf32>
    %94 = vector.shape_cast %93 : vector<16xf32> to vector<16x1xf32>
    %95 = vector.broadcast %94 : vector<16x1xf32> to vector<16x16xf32>
    %96 = arith.subf %92, %95 : vector<16x16xf32>
    %97 = math.exp %96 : vector<16x16xf32>
    %cst_34 = arith.constant dense<0.000000e+00> : vector<16xf32>
    %98 = vector.multi_reduction <add>, %97, %cst_34 [1] : vector<16x16xf32> to vector<16xf32>
    %99 = vector.shape_cast %98 : vector<16xf32> to vector<16x1xf32>
    %100 = tpu.reciprocal %99 {approx = true} : vector<16x1xf32> -> vector<16x1xf32>
    %101 = arith.mulf %99, %100 : vector<16x1xf32>
    %cst_35 = arith.constant 2.000000e+00 : f32
    %102 = vector.broadcast %cst_35 : f32 to vector<16x1xf32>
    %103 = arith.subf %102, %101 : vector<16x1xf32>
    %104 = arith.mulf %100, %103 : vector<16x1xf32>
    %105 = vector.broadcast %104 : vector<16x1xf32> to vector<16x16xf32>
    %106 = arith.mulf %97, %105 : vector<16x16xf32>
    %107 = vector.broadcast %86 : vector<1x32xf32> to vector<16x32xf32>
    %108 = arith.mulf %33, %107 : vector<16x32xf32>
    %cst_36 = arith.constant dense<0.000000e+00> : vector<16x32xf32>
    %109 = tpu.matmul %106, %108, %cst_36 {dimension_numbers = #tpu.dot_dimension_numbers<[1], [0], [0], [1], [0, 0, 1, 1], [], []>} : vector<16x16xf32>, vector<16x32xf32>, vector<16x32xf32> -> vector<16x32xf32>
    %110 = arith.addf %85, %109 : vector<16x32xf32>
    %c11 = arith.constant 11 : index
    %c0_37 = arith.constant 0 : index
    %111 = vector.load %arg2[%c11, %c0_37] : memref<48x128xf32, #tpu.memory_space<vmem>>, vector<1x32xf32>
    %112 = vector.broadcast %111 : vector<1x32xf32> to vector<16x32xf32>
    %113 = arith.mulf %32, %112 : vector<16x32xf32>
    %cst_38 = arith.constant dense<0.000000e+00> : vector<16x16xf32>
    %114 = tpu.matmul %31, %113, %cst_38 {dimension_numbers = #tpu.dot_dimension_numbers<[1], [1], [0], [0], [0, 0, 1, 0], [], []>} : vector<16x32xf32>, vector<16x32xf32>, vector<16x16xf32> -> vector<16x16xf32>
    %cst_39 = arith.constant 0.353553385 : f32
    %115 = vector.broadcast %cst_39 : f32 to vector<16x16xf32>
    %116 = arith.mulf %114, %115 : vector<16x16xf32>
    %117 = arith.addf %116, %34 : vector<16x16xf32>
    %cst_40 = arith.constant dense<0xFF800000> : vector<16xf32>
    %118 = vector.multi_reduction <maximumf>, %117, %cst_40 [1] : vector<16x16xf32> to vector<16xf32>
    %119 = vector.shape_cast %118 : vector<16xf32> to vector<16x1xf32>
    %120 = vector.broadcast %119 : vector<16x1xf32> to vector<16x16xf32>
    %121 = arith.subf %117, %120 : vector<16x16xf32>
    %122 = math.exp %121 : vector<16x16xf32>
    %cst_41 = arith.constant dense<0.000000e+00> : vector<16xf32>
    %123 = vector.multi_reduction <add>, %122, %cst_41 [1] : vector<16x16xf32> to vector<16xf32>
    %124 = vector.shape_cast %123 : vector<16xf32> to vector<16x1xf32>
    %125 = tpu.reciprocal %124 {approx = true} : vector<16x1xf32> -> vector<16x1xf32>
    %126 = arith.mulf %124, %125 : vector<16x1xf32>
    %cst_42 = arith.constant 2.000000e+00 : f32
    %127 = vector.broadcast %cst_42 : f32 to vector<16x1xf32>
    %128 = arith.subf %127, %126 : vector<16x1xf32>
    %129 = arith.mulf %125, %128 : vector<16x1xf32>
    %130 = vector.broadcast %129 : vector<16x1xf32> to vector<16x16xf32>
    %131 = arith.mulf %122, %130 : vector<16x16xf32>
    %132 = vector.broadcast %111 : vector<1x32xf32> to vector<16x32xf32>
    %133 = arith.mulf %33, %132 : vector<16x32xf32>
    %cst_43 = arith.constant dense<0.000000e+00> : vector<16x32xf32>
    %134 = tpu.matmul %131, %133, %cst_43 {dimension_numbers = #tpu.dot_dimension_numbers<[1], [0], [0], [1], [0, 0, 1, 1], [], []>} : vector<16x16xf32>, vector<16x32xf32>, vector<16x32xf32> -> vector<16x32xf32>
    %135 = arith.addf %110, %134 : vector<16x32xf32>
    %c0_44 = arith.constant 0 : index
    %c768 = arith.constant 768 : index
    %136 = vector.load %arg3[%c0_44, %c768] : memref<33x1280xf32, #tpu.memory_space<vmem>>, vector<32x32xf32>
    %cst_45 = arith.constant dense<0.000000e+00> : vector<16x32xf32>
    %137 = tpu.matmul %135, %136, %cst_45 {dimension_numbers = #tpu.dot_dimension_numbers<[1], [0], [0], [1], [0, 0, 1, 1], [], []>} : vector<16x32xf32>, vector<32x32xf32>, vector<16x32xf32> -> vector<16x32xf32>
    %c32_46 = arith.constant 32 : index
    %c768_47 = arith.constant 768 : index
    %138 = vector.load %arg3[%c32_46, %c768_47] : memref<33x1280xf32, #tpu.memory_space<vmem>>, vector<1x32xf32>
    %139 = vector.broadcast %138 : vector<1x32xf32> to vector<16x32xf32>
    %140 = arith.addf %137, %139 : vector<16x32xf32>
    %141 = arith.addf %140, %0 : vector<16x32xf32>
    %c2 = arith.constant 2 : index
    %c0_48 = arith.constant 0 : index
    %142 = vector.load %arg2[%c2, %c0_48] : memref<48x128xf32, #tpu.memory_space<vmem>>, vector<1x32xf32>
    %c3 = arith.constant 3 : index
    %c0_49 = arith.constant 0 : index
    %143 = vector.load %arg2[%c3, %c0_49] : memref<48x128xf32, #tpu.memory_space<vmem>>, vector<1x32xf32>
    %cst_50 = arith.constant dense<0.000000e+00> : vector<16xf32>
    %144 = vector.multi_reduction <add>, %141, %cst_50 [1] : vector<16x32xf32> to vector<16xf32>
    %145 = vector.shape_cast %144 : vector<16xf32> to vector<16x1xf32>
    %146 = arith.mulf %141, %141 : vector<16x32xf32>
    %cst_51 = arith.constant dense<0.000000e+00> : vector<16xf32>
    %147 = vector.multi_reduction <add>, %146, %cst_51 [1] : vector<16x32xf32> to vector<16xf32>
    %148 = vector.shape_cast %147 : vector<16xf32> to vector<16x1xf32>
    %cst_52 = arith.constant 3.125000e-02 : f32
    %149 = vector.broadcast %cst_52 : f32 to vector<16x1xf32>
    %150 = arith.mulf %145, %149 : vector<16x1xf32>
    %cst_53 = arith.constant 3.125000e-02 : f32
    %151 = vector.broadcast %cst_53 : f32 to vector<16x1xf32>
    %152 = arith.mulf %148, %151 : vector<16x1xf32>
    %153 = arith.mulf %150, %150 : vector<16x1xf32>
    %154 = arith.subf %152, %153 : vector<16x1xf32>
    %155 = vector.broadcast %150 : vector<16x1xf32> to vector<16x32xf32>
    %156 = arith.subf %141, %155 : vector<16x32xf32>
    %cst_54 = arith.constant 9.99999974E-6 : f32
    %157 = vector.broadcast %cst_54 : f32 to vector<16x1xf32>
    %158 = arith.addf %154, %157 : vector<16x1xf32>
    %159 = math.rsqrt %158 : vector<16x1xf32>
    %160 = vector.broadcast %159 : vector<16x1xf32> to vector<16x32xf32>
    %161 = arith.mulf %156, %160 : vector<16x32xf32>
    %162 = vector.broadcast %142 : vector<1x32xf32> to vector<16x32xf32>
    %163 = arith.mulf %161, %162 : vector<16x32xf32>
    %164 = vector.broadcast %143 : vector<1x32xf32> to vector<16x32xf32>
    %165 = arith.addf %163, %164 : vector<16x32xf32>
    %c0_55 = arith.constant 0 : index
    %c640 = arith.constant 640 : index
    %166 = vector.load %arg3[%c0_55, %c640] : memref<33x1280xf32, #tpu.memory_space<vmem>>, vector<32x32xf32>
    %cst_56 = arith.constant dense<0.000000e+00> : vector<16x32xf32>
    %167 = tpu.matmul %165, %166, %cst_56 {dimension_numbers = #tpu.dot_dimension_numbers<[1], [0], [0], [1], [0, 0, 1, 1], [], []>} : vector<16x32xf32>, vector<32x32xf32>, vector<16x32xf32> -> vector<16x32xf32>
    %c32_57 = arith.constant 32 : index
    %c640_58 = arith.constant 640 : index
    %168 = vector.load %arg3[%c32_57, %c640_58] : memref<33x1280xf32, #tpu.memory_space<vmem>>, vector<1x32xf32>
    %169 = vector.broadcast %168 : vector<1x32xf32> to vector<16x32xf32>
    %170 = arith.addf %167, %169 : vector<16x32xf32>
    %c0_59 = arith.constant 0 : index
    %c384 = arith.constant 384 : index
    %171 = vector.load %arg3[%c0_59, %c384] : memref<33x1280xf32, #tpu.memory_space<vmem>>, vector<32x256xf32>
    %cst_60 = arith.constant dense<0.000000e+00> : vector<2x256xf32>
    %172 = tpu.matmul %1, %171, %cst_60 {dimension_numbers = #tpu.dot_dimension_numbers<[1], [0], [0], [1], [0, 0, 1, 1], [], []>} : vector<2x32xf32>, vector<32x256xf32>, vector<2x256xf32> -> vector<2x256xf32>
    %c32_61 = arith.constant 32 : index
    %c384_62 = arith.constant 384 : index
    %173 = vector.load %arg3[%c32_61, %c384_62] : memref<33x1280xf32, #tpu.memory_space<vmem>>, vector<1x256xf32>
    %174 = vector.broadcast %173 : vector<1x256xf32> to vector<2x256xf32>
    %175 = arith.addf %172, %174 : vector<2x256xf32>
    %c32_63 = arith.constant 32 : index
    %c0_64 = arith.constant 0 : index
    %176 = vector.load %arg2[%c32_63, %c0_64] : memref<48x128xf32, #tpu.memory_space<vmem>>, vector<16x2xf32>
    %cst_65 = arith.constant dense<0.000000e+00> : vector<16x256xf32>
    %177 = tpu.matmul %176, %175, %cst_65 {dimension_numbers = #tpu.dot_dimension_numbers<[1], [0], [0], [1], [0, 0, 1, 1], [], []>} : vector<16x2xf32>, vector<2x256xf32>, vector<16x256xf32> -> vector<16x256xf32>
    %178 = vector.extract_strided_slice %177 {offsets = [0, 0], sizes = [16, 32], strides = [1, 1]} : vector<16x256xf32> to vector<16x32xf32>
    %179 = vector.extract_strided_slice %177 {offsets = [0, 128], sizes = [16, 32], strides = [1, 1]} : vector<16x256xf32> to vector<16x32xf32>
    %c6 = arith.constant 6 : index
    %c0_66 = arith.constant 0 : index
    %180 = vector.load %arg2[%c6, %c0_66] : memref<48x128xf32, #tpu.memory_space<vmem>>, vector<1x32xf32>
    %c7 = arith.constant 7 : index
    %c0_67 = arith.constant 0 : index
    %181 = vector.load %arg2[%c7, %c0_67] : memref<48x128xf32, #tpu.memory_space<vmem>>, vector<1x32xf32>
    %c0_68 = arith.constant 0 : index
    %c1152 = arith.constant 1152 : index
    %182 = vector.load %arg3[%c0_68, %c1152] : memref<33x1280xf32, #tpu.memory_space<vmem>>, vector<32x4xf32>
    %c8_69 = arith.constant 8 : index
    %c0_70 = arith.constant 0 : index
    %183 = vector.load %arg2[%c8_69, %c0_70] : memref<48x128xf32, #tpu.memory_space<vmem>>, vector<4x32xf32>
    %184 = vector.broadcast %180 : vector<1x32xf32> to vector<16x32xf32>
    %185 = arith.mulf %170, %184 : vector<16x32xf32>
    %cst_71 = arith.constant dense<0.000000e+00> : vector<16x4xf32>
    %186 = tpu.matmul %185, %182, %cst_71 {dimension_numbers = #tpu.dot_dimension_numbers<[1], [0], [0], [1], [0, 0, 1, 1], [], []>} : vector<16x32xf32>, vector<32x4xf32>, vector<16x4xf32> -> vector<16x4xf32>
    %187 = arith.mulf %170, %178 : vector<16x32xf32>
    %cst_72 = arith.constant dense<0.000000e+00> : vector<16x4xf32>
    %188 = tpu.matmul %187, %182, %cst_72 {dimension_numbers = #tpu.dot_dimension_numbers<[1], [0], [0], [1], [0, 0, 1, 1], [], []>} : vector<16x32xf32>, vector<32x4xf32>, vector<16x4xf32> -> vector<16x4xf32>
    %189 = arith.maximumf %186, %188 : vector<16x4xf32>
    %190 = arith.subf %186, %189 : vector<16x4xf32>
    %191 = math.exp %190 : vector<16x4xf32>
    %192 = arith.subf %188, %189 : vector<16x4xf32>
    %193 = math.exp %192 : vector<16x4xf32>
    %194 = arith.addf %191, %193 : vector<16x4xf32>
    %195 = tpu.reciprocal %194 {approx = true} : vector<16x4xf32> -> vector<16x4xf32>
    %196 = arith.mulf %194, %195 : vector<16x4xf32>
    %cst_73 = arith.constant 2.000000e+00 : f32
    %197 = vector.broadcast %cst_73 : f32 to vector<16x4xf32>
    %198 = arith.subf %197, %196 : vector<16x4xf32>
    %199 = arith.mulf %195, %198 : vector<16x4xf32>
    %200 = arith.mulf %191, %199 : vector<16x4xf32>
    %cst_74 = arith.constant dense<0.000000e+00> : vector<16x32xf32>
    %201 = tpu.matmul %200, %183, %cst_74 {dimension_numbers = #tpu.dot_dimension_numbers<[1], [0], [0], [1], [0, 0, 1, 1], [], []>} : vector<16x4xf32>, vector<4x32xf32>, vector<16x32xf32> -> vector<16x32xf32>
    %cst_75 = arith.constant 1.000000e+00 : f32
    %202 = vector.broadcast %cst_75 : f32 to vector<16x32xf32>
    %203 = arith.subf %202, %201 : vector<16x32xf32>
    %204 = vector.broadcast %181 : vector<1x32xf32> to vector<16x32xf32>
    %205 = arith.mulf %201, %204 : vector<16x32xf32>
    %206 = arith.mulf %203, %179 : vector<16x32xf32>
    %207 = arith.addf %205, %206 : vector<16x32xf32>
    %c0_76 = arith.constant 0 : index
    %c896 = arith.constant 896 : index
    %208 = vector.load %arg3[%c0_76, %c896] : memref<33x1280xf32, #tpu.memory_space<vmem>>, vector<32x32xf32>
    %cst_77 = arith.constant dense<0.000000e+00> : vector<16x32xf32>
    %209 = tpu.matmul %207, %208, %cst_77 {dimension_numbers = #tpu.dot_dimension_numbers<[1], [0], [0], [1], [0, 0, 1, 1], [], []>} : vector<16x32xf32>, vector<32x32xf32>, vector<16x32xf32> -> vector<16x32xf32>
    %c32_78 = arith.constant 32 : index
    %c896_79 = arith.constant 896 : index
    %210 = vector.load %arg3[%c32_78, %c896_79] : memref<33x1280xf32, #tpu.memory_space<vmem>>, vector<1x32xf32>
    %211 = vector.broadcast %210 : vector<1x32xf32> to vector<16x32xf32>
    %212 = arith.addf %209, %211 : vector<16x32xf32>
    %213 = arith.addf %212, %141 : vector<16x32xf32>
    %c4 = arith.constant 4 : index
    %c0_80 = arith.constant 0 : index
    %214 = vector.load %arg2[%c4, %c0_80] : memref<48x128xf32, #tpu.memory_space<vmem>>, vector<1x32xf32>
    %c5 = arith.constant 5 : index
    %c0_81 = arith.constant 0 : index
    %215 = vector.load %arg2[%c5, %c0_81] : memref<48x128xf32, #tpu.memory_space<vmem>>, vector<1x32xf32>
    %cst_82 = arith.constant dense<0.000000e+00> : vector<16xf32>
    %216 = vector.multi_reduction <add>, %213, %cst_82 [1] : vector<16x32xf32> to vector<16xf32>
    %217 = vector.shape_cast %216 : vector<16xf32> to vector<16x1xf32>
    %218 = arith.mulf %213, %213 : vector<16x32xf32>
    %cst_83 = arith.constant dense<0.000000e+00> : vector<16xf32>
    %219 = vector.multi_reduction <add>, %218, %cst_83 [1] : vector<16x32xf32> to vector<16xf32>
    %220 = vector.shape_cast %219 : vector<16xf32> to vector<16x1xf32>
    %cst_84 = arith.constant 3.125000e-02 : f32
    %221 = vector.broadcast %cst_84 : f32 to vector<16x1xf32>
    %222 = arith.mulf %217, %221 : vector<16x1xf32>
    %cst_85 = arith.constant 3.125000e-02 : f32
    %223 = vector.broadcast %cst_85 : f32 to vector<16x1xf32>
    %224 = arith.mulf %220, %223 : vector<16x1xf32>
    %225 = arith.mulf %222, %222 : vector<16x1xf32>
    %226 = arith.subf %224, %225 : vector<16x1xf32>
    %227 = vector.broadcast %222 : vector<16x1xf32> to vector<16x32xf32>
    %228 = arith.subf %213, %227 : vector<16x32xf32>
    %cst_86 = arith.constant 9.99999974E-6 : f32
    %229 = vector.broadcast %cst_86 : f32 to vector<16x1xf32>
    %230 = arith.addf %226, %229 : vector<16x1xf32>
    %231 = math.rsqrt %230 : vector<16x1xf32>
    %232 = vector.broadcast %231 : vector<16x1xf32> to vector<16x32xf32>
    %233 = arith.mulf %228, %232 : vector<16x32xf32>
    %234 = vector.broadcast %214 : vector<1x32xf32> to vector<16x32xf32>
    %235 = arith.mulf %233, %234 : vector<16x32xf32>
    %236 = vector.broadcast %215 : vector<1x32xf32> to vector<16x32xf32>
    %237 = arith.addf %235, %236 : vector<16x32xf32>
    %c0_87 = arith.constant 0 : index
    %c1024 = arith.constant 1024 : index
    %238 = vector.load %arg3[%c0_87, %c1024] : memref<33x1280xf32, #tpu.memory_space<vmem>>, vector<32x128xf32>
    %cst_88 = arith.constant dense<0.000000e+00> : vector<16x128xf32>
    %239 = tpu.matmul %237, %238, %cst_88 {dimension_numbers = #tpu.dot_dimension_numbers<[1], [0], [0], [1], [0, 0, 1, 1], [], []>} : vector<16x32xf32>, vector<32x128xf32>, vector<16x128xf32> -> vector<16x128xf32>
    %c32_89 = arith.constant 32 : index
    %c1024_90 = arith.constant 1024 : index
    %240 = vector.load %arg3[%c32_89, %c1024_90] : memref<33x1280xf32, #tpu.memory_space<vmem>>, vector<1x128xf32>
    %241 = vector.broadcast %240 : vector<1x128xf32> to vector<16x128xf32>
    %242 = arith.addf %239, %241 : vector<16x128xf32>
    %cst_91 = arith.constant 5.000000e-01 : f32
    %243 = vector.broadcast %cst_91 : f32 to vector<16x128xf32>
    %244 = arith.mulf %243, %242 : vector<16x128xf32>
    %cst_92 = arith.constant 4.471500e-02 : f32
    %245 = vector.broadcast %cst_92 : f32 to vector<16x128xf32>
    %246 = arith.mulf %245, %242 : vector<16x128xf32>
    %247 = arith.mulf %246, %242 : vector<16x128xf32>
    %248 = arith.mulf %247, %242 : vector<16x128xf32>
    %249 = arith.addf %242, %248 : vector<16x128xf32>
    %cst_93 = arith.constant 0.797884583 : f32
    %250 = vector.broadcast %cst_93 : f32 to vector<16x128xf32>
    %251 = arith.mulf %250, %249 : vector<16x128xf32>
    %252 = math.tanh %251 : vector<16x128xf32>
    %cst_94 = arith.constant 1.000000e+00 : f32
    %253 = vector.broadcast %cst_94 : f32 to vector<16x128xf32>
    %254 = arith.addf %253, %252 : vector<16x128xf32>
    %255 = arith.mulf %244, %254 : vector<16x128xf32>
    %c0_95 = arith.constant 0 : index
    %c0_96 = arith.constant 0 : index
    %256 = vector.load %arg4[%c0_95, %c0_96] : memref<128x32xf32, #tpu.memory_space<vmem>>, vector<128x32xf32>
    %cst_97 = arith.constant dense<0.000000e+00> : vector<16x32xf32>
    %257 = tpu.matmul %255, %256, %cst_97 {dimension_numbers = #tpu.dot_dimension_numbers<[1], [0], [0], [1], [0, 0, 1, 1], [], []>} : vector<16x128xf32>, vector<128x32xf32>, vector<16x32xf32> -> vector<16x32xf32>
    %c12 = arith.constant 12 : index
    %c0_98 = arith.constant 0 : index
    %258 = vector.load %arg2[%c12, %c0_98] : memref<48x128xf32, #tpu.memory_space<vmem>>, vector<1x32xf32>
    %259 = vector.broadcast %258 : vector<1x32xf32> to vector<16x32xf32>
    %260 = arith.addf %257, %259 : vector<16x32xf32>
    %261 = arith.addf %213, %260 : vector<16x32xf32>
    %c0_99 = arith.constant 0 : index
    %c0_100 = arith.constant 0 : index
    %262 = vector.load %arg5[%c0_99, %c0_100] : memref<16x32xf32, #tpu.memory_space<vmem>>, vector<16x32xf32>
    tpu.vector_store %arg5[%c0_99, %c0_100], %261 {strides = array<i32>} : memref<16x32xf32, #tpu.memory_space<vmem>>, vector<16x32xf32>,
    return
  }
}

</mosaic_0001>

<bundles_post_ra>
// kernel: tpu_custom_call.1
= control target key start
LH: loop header
LB: loop body
LE: loop exit
PB: predicated region body
PF: predicated region fallthrough
CT: control target
= control target key end

     0   :  { %10 = vsyncpa [#allocation3], 0  ;;  %s2966_s0 = inlined_call_operand.vmem [shape: f32[16,32], index: 0, kind: input, shape index: {}]   ;;  %s2967_s1 = inlined_call_operand.vmem [shape: f32[2,32], index: 1, kind: input, shape index: {}]   ;;  %s2968_s2 = inlined_call_operand.vmem [shape: f32[48,128], index: 2, kind: input, shape index: {}]   ;;  %s2969_s3 = inlined_call_operand.hbm [shape: f32[33,1280], index: 3, kind: input, shape index: {}]   ;;  %s2970_s4 = inlined_call_operand.vmem [shape: f32[128,32], index: 4, kind: input, shape index: {}]   ;;  %s2971_s5 = inlined_call_operand.hbm [shape: f32[16,32], index: 5, kind: output, shape index: {}]  }
   0x1   :  { %11 = vsyncpa [#allocation4], 0  ;;  %s2596_s18 = smov [#allocation2]  }
   0x2   :  { %s23_s19 = sshll.u32 %s2596_s18, 4  ;;  %s24_s19 = int_to_ptr.vmem [resolvable:$true] %s23_s19 }
   0x3   :  { %s2560_s20 = scalar_lea.vmem %s24_s19, 6400  ;;  %p2565_p1 = scmp.lt.s32.totalorder %s24_s19, %s24_s19 }
   0x4   :  { %p2561_p0 = scmp.ne.s32.totalorder %s24_s19, %s2560_s20  ;;  %p2566_p2 = scmp.lt.s32.totalorder %s2560_s20, %s2560_s20 }
   0x6   :  { %p2567_p3 = por %p2566_p2, %p2565_p1 }
   0x8   :  { %p2568_p4 = pnand %p2567_p3, %p2561_p0 }
   0xa   :  { %2571 = shalt.err (!%p2568_p4)
}
   0xb   :  { %s2597_s21 = smov 1280   ;;  %s2598_s22 = smov 80  }
   0xc   :  { %29 = dma.hbm_to_vmem [thread:$0]  %s2969_s3, 6400, %s24_s19, [#allocation3], %s2597_s21, %s2597_s21, %s2598_s22  }
   0xd   :  { %2592 = dma.done.wait [#allocation3], 6400  }
   0xe   :  { %2593 = vsyncadd [#allocation3], 4294960896  ;;  %vm40_vm0 = vcmask 261120   ;;  %v2639_v0 = vld [vmem:[%s2966_s0 + $0x8] sm:$0xff]  ;;  %v2644_v1 = vld [vmem:[%s2966_s0] sm:$0xff]  ;;  %v2599_v12 = vmov 0.0   ;;  %v98_v47 = vlaneseq }
   0xf   :  { %v44_v2 = vsel %vm40_vm0, %v2639_v0, 0.0  ;;  %v41_v3 = vsel %vm40_vm0, %v2644_v1, 0.0  ;;  %v48_v4 = vmul.f32 %v2639_v0, %v2639_v0  ;;  %v47_v5 = vmul.f32 %v2644_v1, %v2644_v1  ;;  %v93_v8 = vld [vmem:[#allocation2 + $0xf8] sm:$0xff]  ;;  %v92_v9 = vld [vmem:[#allocation2 + $0xf0] sm:$0xff]  ;;  %v90_v10 = vld [vmem:[#allocation2 + $0xa8] sm:$0xff]  ;;  %183 = vmatprep.mubr.f32.mxu1 %v2599_v12  ;;  %s2600_s15 = smov [#allocation5]  }
  0x10   :  { %45 = vadd.xlane.f32.xlu1 %v44_v2  ;;  %42 = vadd.xlane.f32.xlu0 %v41_v3  ;;  %v89_v11 = vld [vmem:[#allocation2 + $0xa0] sm:$0xff]  ;;  %v87_v13 = vld [vmem:[#allocation2 + $0x58] sm:$0xff]  ;;  %v86_v14 = vld [vmem:[#allocation2 + $0x50] sm:$0xff]  ;;  %v2670_v48 = vshrl.u32 %v98_v47, 7  ;;  %vm371_vm1 = vcmask 130048   ;;  %vm1418_vm2 = vcmask 1041408  }
  0x11   :  { %v52_v6 = vsel %vm40_vm0, %v48_v4, 0.0  ;;  %v49_v7 = vsel %vm40_vm0, %v47_v5, 0.0  ;;  %143 = vmatprep.subr.mxu1 %v93_v8  ;;  %v84_v15 = vld [vmem:[#allocation2 + $0x8] sm:$0xff]  ;;  %v83_v16 = vld [vmem:[#allocation2] sm:$0xff]  ;;  %v91_v43 = vld [vmem:[#allocation2 + $0xb0] sm:$0xff]  ;;  %vm1411_vm3 = vcmask 15360  }
  0x12   :  { %144 = vmatpush1.msra.mxu1 %v92_v9  ;;  %v94_v17 = vld [vmem:[#allocation2 + $0x100] sm:$0xff]  ;;  %v85_v46 = vld [vmem:[#allocation2 + $0x10] sm:$0xff]  ;;  %v100_v49 = vsub.s32 0, %v2670_v48  ;;  %v104_v51 = vsub.s32 1, %v2670_v48  ;;  %v108_v56 = vsub.s32 2, %v2670_v48  ;;  %vm1712_vm4 = vcmask 1043456  }
  0x13   :  { %145 = vmatprep.subr.mxu1 %v90_v10  ;;  %v2156_v36 = vld [vmem:[%s2968_s2] ss:$0 sm:$0xff]  ;;  %v2157_v39 = vld [vmem:[%s2968_s2 + $0x1] ss:$0 sm:$0xff]  ;;  %v2176_v58 = vld [vmem:[%s2968_s2 + $0xa] ss:$0 sm:$0xff] }
  0x14   :  { %53 = vadd.xlane.f32.xlu1 %v52_v6  ;;  %50 = vadd.xlane.f32.xlu0 %v49_v7  ;;  %v88_v44 = vld [vmem:[#allocation2 + $0x60] sm:$0xff]  ;;  %v2689_v60 = vld [vmem:[%s2968_s2 + $0xb] ss:$0 sm:$0xff]  ;;  %v2162_v6 = vld [vmem:[%s2968_s2 + $0x8] ss:$0 sm:$0xff]  ;;  %vm1705_vm5 = vcmask 31744  }
  0x15   :  { %146 = vmatpush1.msra.mxu1 %v89_v11  ;;  %v96_v50 = vld [vmem:[#allocation2 + $0x140] ss:$8 sm:$0x7]  ;;  %v2167_v10 = vld [vmem:[%s2968_s2 + $0x9] ss:$0 sm:$0xff]  ;;  %s2144_s16 = sshll.u32 %s2600_s15, 4  ;;  %s2145_s16 = int_to_ptr.vmem [resolvable:$true] %s2144_s16 }
  0x16   :  { %147 = vmatprep.subr.mxu1 %v87_v13  ;;  %v101_v52 = vrot.slane %v96_v50, %v100_v49  ;;  %v105_v53 = vrot.slane %v96_v50, %v104_v51  ;;  %v109_v62 = vrot.slane %v96_v50, %v108_v56  ;;  %s2572_s17 = scalar_lea.vmem %s2145_s16, 256  ;;  %p2577_p6 = scmp.lt.s32.totalorder %s2145_s16, %s2145_s16 }
  0x17   :  { %148 = vmatpush1.msra.mxu1 %v86_v14  ;;  %p2573_p5 = scmp.ne.s32.totalorder %s2145_s16, %s2572_s17  ;;  %p2578_p7 = scmp.lt.s32.totalorder %s2572_s17, %s2572_s17 }
  0x18   :  { %149 = vmatprep.subr.mxu1 %v84_v15 }
  0x19   :  { %150 = vmatpush1.msra.mxu1 %v83_v16  ;;  %p2579_p8 = por %p2578_p7, %p2577_p6 }
  0x1a   :  { %2312 = vmatprep.subr.mxu1 %v94_v17 }
  0x1b   :  { %p2580_p9 = pnand %p2579_p8, %p2573_p5 }
  0x99   :  { %v46_v18 = vpop.xlane.xlu1 %45  ;;  %v43_v19 = vpop.xlane.xlu0 %42 }
  0x9a   :  { %v56_v20 = vmul.f32 0.03125, %v46_v18  ;;  %v55_v21 = vmul.f32 0.03125, %v43_v19 }
  0x9c   :  { %v60_v22 = vmul.f32 %v56_v20, %v56_v20  ;;  %v59_v25 = vmul.f32 %v55_v21, %v55_v21  ;;  %v64_v33 = vsub.f32 %v2639_v0, %v56_v20  ;;  %v63_v34 = vsub.f32 %v2644_v1, %v55_v21 }
  0x9d   :  { %v54_v23 = vpop.xlane.xlu1 %53  ;;  %v51_v24 = vpop.xlane.xlu0 %50 }
  0x9e   :  { %v58_v26 = vmul.f32 0.03125, %v54_v23  ;;  %v57_v27 = vmul.f32 0.03125, %v51_v24 }
  0xa0   :  { %v62_v28 = vsub.f32 %v58_v26, %v60_v22  ;;  %v61_v29 = vsub.f32 %v57_v27, %v59_v25 }
  0xa2   :  { %v66_v30 = vadd.f32 1e-05, %v62_v28  ;;  %v65_v31 = vadd.f32 1e-05, %v61_v29 }
  0xa4   :  { %2492 = vrsqrt.f32 %v66_v30  ;;  %v2743_v30 = vld [vmem:[%s2968_s2 + $0x18] sm:$0xff] }
  0xa5   :  { %2494 = vrsqrt.f32 %v65_v31 }
  0xb1   :  { %v2493_v32 = vpop.eup %2492 }
  0xb2   :  { %v2495_v35 = vpop.eup %2494  ;;  %v70_v38 = vmul.f32 %v2493_v32, %v64_v33  ;;  %v2749_v33 = vld [vmem:[%s2968_s2 + $0x10] sm:$0xff] }
  0xb3   :  { %v69_v37 = vmul.f32 %v2495_v35, %v63_v34 }
  0xb4   :  { %v76_v42 = vmul.f32 %v2156_v36, %v70_v38 }
  0xb5   :  { %v75_v40 = vmul.f32 %v2156_v36, %v69_v37 }
  0xb6   :  { %v82_v45 = vadd.f32 %v2157_v39, %v76_v42 }
  0xb7   :  { %v81_v41 = vadd.f32 %v2157_v39, %v75_v40 }
  0xb9   :  { %2158 = vmatmul.mubr.msk.f32.vlgmr.msra.gmra.mxu1 %vm40_vm0, %v81_v41 }
  0xba   :  { %2313 = vmatpush3.msra.mxu1 %v94_v17  ;;  %189 = vmatprep.mubr.f32.mxu1 %v2599_v12 }
  0xbb   :  { %2314 = vmatprep.subr.mxu1 %v91_v43 }
  0xbc   :  { %2315 = vmatpush3.msra.mxu1 %v91_v43 }
  0xbd   :  { %2159 = vmatmul.mubr.msk.f32.gmra.mxu1 %vm40_vm0, %v82_v45  ;;  %2316 = vmatprep.subr.mxu1 %v88_v44 }
  0xbe   :  { %2317 = vmatpush3.msra.mxu1 %v88_v44  ;;  %2320 = vmatprep.mubr.msk.f32.mxu1 %vm40_vm0, %v81_v41 }
  0xbf   :  { %2318 = vmatprep.subr.mxu1 %v85_v46 }
  0xc0   :  { %2319 = vmatpush3.msra.mxu1 %v85_v46 }
  0xc1   :  { %2321 = vmatmul.mubr.msk.f32.vlgmr.msra.gmra.mxu1 %vm40_vm0, %v82_v45 }
 0x179   :  { %v185_v54 = vpop.f32.mrf.mxu1 }
 0x17a   :  { %v2678_v55 = vadd.f32 %v185_v54, %v101_v52 }
 0x17b   :  { %v187_v57 = vpop.f32.mrf.mxu1 }
 0x17c   :  { %v188_v59 = vadd.f32 %v187_v57, %v105_v53  ;;  %2327 = vmatprep.mubr.msk.f32.mxu1 %vm40_vm0, %v2678_v55 }
 0x17d   :  { %v191_v61 = vpop.f32.mrf.mxu1 }
 0x17e   :  { %v2691_v63 = vmul.f32 %v2176_v58, %v188_v59  ;;  %v2694_v3 = vmul.f32 %v2689_v60, %v188_v59  ;;  %v278_v14 = vmul.f32 %v2162_v6, %v188_v59  ;;  %v2720_v20 = vadd.f32 %v191_v61, %v101_v52 }
 0x17f   :  { %v193_v2 = vpop.f32.mrf.mxu1  ;;  %v407_v21 = vmul.f32 %v2167_v10, %v188_v59 }
 0x180   :  { %v194_v4 = vadd.f32 %v193_v2, %v105_v53 }
 0x181   :  { %v2322_v5 = vpop.f32.mrf.mxu1 }
 0x182   :  { %v2699_v7 = vadd.f32 %v2322_v5, %v109_v62  ;;  %v279_v8 = vmul.f32 %v2162_v6, %v194_v4  ;;  %v2705_v11 = vmul.f32 %v2689_v60, %v194_v4  ;;  %v408_v18 = vmul.f32 %v2167_v10, %v194_v4 }
 0x183   :  { %v262_v9 = vpop.f32.mrf.mxu1  ;;  %v2717_v19 = vmul.f32 %v2176_v58, %v194_v4 }
 0x184   :  { %v2707_v13 = vadd.f32 %v262_v9, %v109_v62  ;;  %2323 = vmatprep.subr.msk.mxu1 %vm40_vm0, %v279_v8  ;;  %v523_v15 = vmul.f32 %v2167_v10, %v2699_v7  ;;  %v401_v22 = vmul.f32 %v2162_v6, %v2699_v7  ;;  %v2737_v24 = vmul.f32 %v2176_v58, %v2699_v7 }
 0x185   :  { %2324 = vmatpush3.xpose.msk.msra.mxu1 %vm40_vm0, %v279_v8 }
 0x186   :  { %2325 = vmatprep.subr.msk.mxu1 %vm40_vm0, %v278_v14  ;;  %2337 = vmatprep.subr.mxu0 %v523_v15  ;;  %v522_v16 = vmul.f32 %v2167_v10, %v2707_v13  ;;  %v2715_v17 = vmul.f32 %v2176_v58, %v2707_v13  ;;  %v400_v23 = vmul.f32 %v2162_v6, %v2707_v13 }
 0x187   :  { %2338 = vmatpush3.msra.mxu0 %v523_v15  ;;  %v1011_v15 = vmul.f32 %v2689_v60, %v2707_v13 }
 0x188   :  { %2339 = vmatprep.subr.mxu0 %v522_v16 }
 0x189   :  { %2326 = vmatpush3.xpose.msk.msra.mxu1 %vm40_vm0, %v278_v14  ;;  %2340 = vmatpush3.msra.mxu0 %v522_v16  ;;  %v1012_v14 = vmul.f32 %v2689_v60, %v2699_v7 }
 0x18a   :  { %2330 = vmatprep.subr.msk.mxu1 %vm40_vm0, %v408_v18  ;;  %2351 = vmatprep.subr.msk.mxu0 %vm40_vm0, %v2717_v19 }
 0x18c   :  { %2328 = vmatmul.mubr.msk.f32.vlgmr.msra.gmra.mxu1 %vm40_vm0, %v2720_v20 }
 0x18d   :  { %2331 = vmatpush3.xpose.msk.msra.mxu1 %vm40_vm0, %v408_v18  ;;  %2334 = vmatprep.mubr.msk.f32.mxu1 %vm40_vm0, %v2678_v55 }
 0x18e   :  { %2332 = vmatprep.subr.msk.mxu1 %vm40_vm0, %v407_v21 }
 0x191   :  { %2333 = vmatpush3.xpose.msk.msra.mxu1 %vm40_vm0, %v407_v21 }
 0x192   :  { %2344 = vmatprep.subr.mxu1 %v401_v22 }
 0x194   :  { %2335 = vmatmul.mubr.msk.f32.vlgmr.msra.gmra.mxu1 %vm40_vm0, %v2720_v20 }
 0x195   :  { %2345 = vmatpush3.msra.mxu1 %v401_v22 }
 0x196   :  { %2346 = vmatprep.subr.mxu1 %v400_v23 }
 0x197   :  { %2347 = vmatpush3.msra.mxu1 %v400_v23 }
 0x198   :  { %2358 = vmatprep.subr.mxu1 %v2737_v24 }
 0x24c   :  { %v2329_v25 = vpop.f32.mrf.mxu1 }
 0x24d   :  { %v368_v43 = vmul.f32 0.35355338, %v2329_v25 }
 0x24e   :  { %v358_v26 = vpop.f32.mrf.mxu1 }
 0x24f   :  { %v367_v44 = vmul.f32 0.35355338, %v358_v26  ;;  %v370_v47 = vadd.f32 %v368_v43, %v2743_v30 }
 0x251   :  { %v369_v53 = vadd.f32 %v367_v44, %v2749_v33  ;;  %v375_v54 = vsel %vm371_vm1, %v370_v47, -inf }
 0x253   :  { %v372_v56 = vsel %vm371_vm1, %v369_v53, -inf }
 0x254   :  { %v2336_v27 = vpop.f32.mrf.mxu1 }
 0x255   :  { %v491_v28 = vmul.f32 0.35355338, %v2336_v27 }
 0x256   :  { %v481_v29 = vpop.f32.mrf.mxu1 }
 0x257   :  { %v490_v31 = vmul.f32 0.35355338, %v481_v29  ;;  %v493_v32 = vadd.f32 %v491_v28, %v2743_v30 }
 0x259   :  { %v497_v34 = vsel %vm371_vm1, %v493_v32, -inf  ;;  %v492_v35 = vadd.f32 %v490_v31, %v2749_v33 }
 0x25a   :  { %498 = vmax.xlane.f32.xlu1 %v497_v34 }
 0x25b   :  { %v494_v36 = vsel %vm371_vm1, %v492_v35, -inf }
 0x25c   :  { %495 = vmax.xlane.f32.xlu0 %v494_v36 }
 0x2e3   :  { %v499_v37 = vpop.xlane.xlu1 %498 }
 0x2e4   :  { %v501_v38 = vsub.f32 %v493_v32, %v499_v37 }
 0x2e5   :  { %v496_v39 = vpop.xlane.xlu0 %495 }
 0x2e6   :  { %v504_v40 = vmul.f32 1.442695, %v501_v38  ;;  %v500_v41 = vsub.f32 %v492_v35, %v496_v39 }
 0x2e8   :  { %2496 = vpow2.f32 %v504_v40  ;;  %v502_v42 = vmul.f32 1.442695, %v500_v41 }
 0x2ea   :  { %2498 = vpow2.f32 %v502_v42 }
 0x2f5   :  { %v2497_v45 = vpop.eup %2496 }
 0x2f6   :  { %v509_v46 = vsel %vm371_vm1, %v2497_v45, 0.0 }
 0x2f7   :  { %v2499_v50 = vpop.eup %2498  ;;  %510 = vadd.xlane.f32.xlu1 %v509_v46 }
 0x2f8   :  { %v506_v52 = vsel %vm371_vm1, %v2499_v50, 0.0 }
 0x2f9   :  { %507 = vadd.xlane.f32.xlu0 %v506_v52 }
 0x2fb   :  { %376 = vmax.xlane.f32.xlu1 %v375_v54 }
 0x2fd   :  { %373 = vmax.xlane.f32.xlu0 %v372_v56 }
 0x380   :  { %v511_v57 = vpop.xlane.xlu1 %510 }
 0x381   :  { %2500 = vrcp.f32 %v511_v57 }
 0x382   :  { %v508_v58 = vpop.xlane.xlu0 %507 }
 0x383   :  { %2502 = vrcp.f32 %v508_v58 }
 0x384   :  { %v377_v16 = vpop.xlane.xlu1 %376 }
 0x386   :  { %v374_v18 = vpop.xlane.xlu0 %373 }
 0x387   :  { %v378_v21 = vsub.f32 %v369_v53, %v374_v18 }
 0x389   :  { %v380_v23 = vmul.f32 1.442695, %v378_v21 }
 0x38e   :  { %v2501_v59 = vpop.eup %2500 }
 0x38f   :  { %v515_v61 = vmul.f32 %v2501_v59, %v511_v57 }
 0x390   :  { %v2503_v62 = vpop.eup %2502 }
 0x391   :  { %v517_v2 = vsub.f32 2.0, %v515_v61  ;;  %v514_v4 = vmul.f32 %v2503_v62, %v508_v58 }
 0x393   :  { %v516_v5 = vsub.f32 2.0, %v514_v4  ;;  %v519_v6 = vmul.f32 %v2501_v59, %v517_v2 }
 0x395   :  { %v518_v8 = vmul.f32 %v2503_v62, %v516_v5  ;;  %v521_v10 = vmul.f32 %v2497_v45, %v519_v6 }
 0x397   :  { %v520_v9 = vmul.f32 %v2499_v50, %v518_v8 }
 0x399   :  { %2341 = vmatprep.mubr.msk.f32.mxu0 %vm371_vm1, %v520_v9 }
 0x39a   :  { %2342 = vmatmul.mubr.msk.f32.vlgmr.msra.gmra.mxu0 %vm371_vm1, %v521_v10 }
 0x39b   :  { %2352 = vmatpush3.xpose.msk.msra.mxu0 %vm40_vm0, %v2717_v19  ;;  %2355 = vmatprep.mubr.msk.f32.mxu0 %vm40_vm0, %v2678_v55  ;;  %v379_v19 = vsub.f32 %v370_v47, %v377_v16 }
 0x39c   :  { %2353 = vmatprep.subr.msk.mxu0 %vm40_vm0, %v2691_v63 }
 0x39d   :  { %v382_v22 = vmul.f32 1.442695, %v379_v19 }
 0x39f   :  { %2354 = vmatpush3.xpose.msk.msra.mxu0 %vm40_vm0, %v2691_v63  ;;  %2504 = vpow2.f32 %v382_v22 }
 0x3a0   :  { %2372 = vmatprep.subr.mxu0 %v1012_v14  ;;  %2506 = vpow2.f32 %v380_v23 }
 0x3a2   :  { %2356 = vmatmul.mubr.msk.f32.vlgmr.msra.gmra.mxu0 %vm40_vm0, %v2720_v20 }
 0x3a3   :  { %2373 = vmatpush3.msra.mxu0 %v1012_v14 }
 0x3a4   :  { %2374 = vmatprep.subr.mxu0 %v1011_v15 }
 0x3a5   :  { %2375 = vmatpush3.msra.mxu0 %v1011_v15 }
 0x3ac   :  { %v2505_v31 = vpop.eup %2504 }
 0x3ad   :  { %v2507_v34 = vpop.eup %2506  ;;  %v387_v35 = vsel %vm371_vm1, %v2505_v31, 0.0 }
 0x3ae   :  { %v384_v36 = vsel %vm371_vm1, %v2507_v34, 0.0 }
 0x45a   :  { %v2776_v7 = vpop.f32.mrf.mxu0 }
 0x45c   :  { %v2778_v63 = vpop.f32.mrf.mxu0 }
 0x462   :  { %v2357_v25 = vpop.f32.mrf.mxu0 }
 0x463   :  { %v775_v26 = vmul.f32 0.35355338, %v2357_v25 }
 0x464   :  { %v765_v27 = vpop.f32.mrf.mxu0 }
 0x465   :  { %v774_v28 = vmul.f32 0.35355338, %v765_v27  ;;  %v777_v60 = vadd.f32 %v775_v26, %v2743_v30 }
 0x467   :  { %v781_v13 = vsel %vm371_vm1, %v777_v60, -inf  ;;  %v776_v29 = vadd.f32 %v774_v28, %v2749_v33 }
 0x468   :  { %782 = vmax.xlane.f32.xlu1 %v781_v13 }
 0x469   :  { %v778_v32 = vsel %vm371_vm1, %v776_v29, -inf }
 0x46a   :  { %779 = vmax.xlane.f32.xlu0 %v778_v32 }
 0x46c   :  { %388 = vadd.xlane.f32.xlu1 %v387_v35 }
 0x46e   :  { %385 = vadd.xlane.f32.xlu0 %v384_v36 }
 0x4f1   :  { %v783_v37 = vpop.xlane.xlu1 %782 }
 0x4f2   :  { %v785_v38 = vsub.f32 %v777_v60, %v783_v37 }
 0x4f3   :  { %v780_v39 = vpop.xlane.xlu0 %779 }
 0x4f4   :  { %v788_v40 = vmul.f32 1.442695, %v785_v38  ;;  %v784_v41 = vsub.f32 %v776_v29, %v780_v39 }
 0x4f5   :  { %v389_v42 = vpop.xlane.xlu1 %388 }
 0x4f6   :  { %2508 = vpow2.f32 %v788_v40  ;;  %v786_v43 = vmul.f32 1.442695, %v784_v41 }
 0x4f7   :  { %2510 = vrcp.f32 %v389_v42  ;;  %v386_v44 = vpop.xlane.xlu0 %385 }
 0x4f8   :  { %2512 = vpow2.f32 %v786_v43 }
 0x4f9   :  { %2514 = vrcp.f32 %v386_v44 }
 0x503   :  { %v2509_v45 = vpop.eup %2508 }
 0x504   :  { %v2511_v46 = vpop.eup %2510  ;;  %v793_v47 = vsel %vm371_vm1, %v2509_v45, 0.0 }
 0x505   :  { %v2513_v50 = vpop.eup %2512  ;;  %v393_v52 = vmul.f32 %v2511_v46, %v389_v42  ;;  %794 = vadd.xlane.f32.xlu1 %v793_v47 }
 0x506   :  { %v2515_v53 = vpop.eup %2514  ;;  %v790_v54 = vsel %vm371_vm1, %v2513_v50, 0.0 }
 0x507   :  { %v395_v56 = vsub.f32 2.0, %v393_v52  ;;  %v392_v57 = vmul.f32 %v2515_v53, %v386_v44  ;;  %791 = vadd.xlane.f32.xlu0 %v790_v54  ;;  %v1098_v54 = vld [vmem:[#allocation2 + $0xd0] sm:$0xff] }
 0x509   :  { %v394_v58 = vsub.f32 2.0, %v392_v57  ;;  %v397_v59 = vmul.f32 %v2511_v46, %v395_v56  ;;  %v1097_v56 = vld [vmem:[#allocation2 + $0x80] sm:$0xff]  ;;  %v1096_v57 = vld [vmem:[#allocation2 + $0x30] sm:$0xff] }
 0x50b   :  { %v396_v61 = vmul.f32 %v2515_v53, %v394_v58  ;;  %v399_v2 = vmul.f32 %v2505_v31, %v397_v59  ;;  %v1321_v58 = vld [vmem:[#allocation2 + $0x110] sm:$0xff] }
 0x50d   :  { %v398_v62 = vmul.f32 %v2507_v34, %v396_v61 }
 0x50f   :  { %2348 = vmatprep.mubr.msk.f32.mxu1 %vm371_vm1, %v398_v62 }
 0x510   :  { %2349 = vmatmul.mubr.msk.f32.vlgmr.msra.gmra.mxu1 %vm371_vm1, %v399_v2 }
 0x511   :  { %2359 = vmatpush3.msra.mxu1 %v2737_v24 }
 0x512   :  { %2360 = vmatprep.subr.mxu1 %v2715_v17 }
 0x513   :  { %2361 = vmatpush3.msra.mxu1 %v2715_v17 }
 0x514   :  { %2365 = vmatprep.subr.msk.mxu1 %vm40_vm0, %v2705_v11 }
 0x58e   :  { %v795_v4 = vpop.xlane.xlu1 %794 }
 0x58f   :  { %2516 = vrcp.f32 %v795_v4 }
 0x590   :  { %v792_v5 = vpop.xlane.xlu0 %791 }
 0x591   :  { %2518 = vrcp.f32 %v792_v5 }
 0x59c   :  { %v2517_v6 = vpop.eup %2516 }
 0x59d   :  { %v799_v8 = vmul.f32 %v2517_v6, %v795_v4 }
 0x59e   :  { %v2519_v9 = vpop.eup %2518 }
 0x59f   :  { %v801_v10 = vsub.f32 2.0, %v799_v8  ;;  %v798_v14 = vmul.f32 %v2519_v9, %v792_v5  ;;  %v1319_v8 = vld [vmem:[#allocation2 + $0xc0] sm:$0xff] }
 0x5a1   :  { %v800_v15 = vsub.f32 2.0, %v798_v14  ;;  %v803_v16 = vmul.f32 %v2517_v6, %v801_v10  ;;  %v1320_v6 = vld [vmem:[#allocation2 + $0x108] sm:$0xff]  ;;  %v1317_v10 = vld [vmem:[#allocation2 + $0x70] sm:$0xff] }
 0x5a2   :  { %v1316_v14 = vld [vmem:[#allocation2 + $0x68] sm:$0xff] }
 0x5a3   :  { %v802_v18 = vmul.f32 %v2519_v9, %v800_v15  ;;  %v805_v19 = vmul.f32 %v2509_v45, %v803_v16  ;;  %v1318_v9 = vld [vmem:[#allocation2 + $0xb8] sm:$0xff]  ;;  %v37_v16 = vld [vmem:[%s2967_s1] sm:$0x3] }
 0x5a4   :  { %v1314_v15 = vld [vmem:[#allocation2 + $0x18] sm:$0xff] }
 0x5a5   :  { %v804_v24 = vmul.f32 %v2513_v50, %v802_v18  ;;  %v1100_v18 = vld [vmem:[#allocation2 + $0x170] ss:$0 sm:$0xff] }
 0x5a7   :  { %2362 = vmatprep.mubr.msk.f32.mxu1 %vm371_vm1, %v804_v24 }
 0x5a8   :  { %2363 = vmatmul.mubr.msk.f32.vlgmr.msra.gmra.mxu1 %vm371_vm1, %v805_v19 }
 0x5a9   :  { %2366 = vmatpush3.xpose.msk.msra.mxu1 %vm40_vm0, %v2705_v11  ;;  %2369 = vmatprep.mubr.msk.f32.mxu1 %vm40_vm0, %v2678_v55 }
 0x5aa   :  { %2367 = vmatprep.subr.msk.mxu1 %vm40_vm0, %v2694_v3 }
 0x5ad   :  { %2368 = vmatpush3.xpose.msk.msra.mxu1 %vm40_vm0, %v2694_v3 }
 0x5b0   :  { %2370 = vmatmul.mubr.msk.f32.vlgmr.msra.gmra.mxu1 %vm40_vm0, %v2720_v20 }
 0x5d0   :  { %v2350_v17 = vpop.f32.mrf.mxu1 }
 0x5d1   :  { %v683_v22 = vadd.f32 %v2350_v17, %v2776_v7 }
 0x5d2   :  { %v677_v21 = vpop.f32.mrf.mxu1 }
 0x5d3   :  { %v678_v59 = vadd.f32 %v677_v21, %v2778_v63  ;;  %v1315_v63 = vld [vmem:[#allocation2 + $0x20] sm:$0xff] }
 0x668   :  { %v2364_v23 = vpop.f32.mrf.mxu1 }
 0x669   :  { %v890_v25 = vadd.f32 %v2364_v23, %v683_v22 }
 0x66a   :  { %v880_v26 = vpop.f32.mrf.mxu1 }
 0x66b   :  { %v889_v62 = vadd.f32 %v880_v26, %v678_v59 }
 0x670   :  { %v2371_v11 = vpop.f32.mrf.mxu1 }
 0x671   :  { %v980_v27 = vmul.f32 0.35355338, %v2371_v11 }
 0x672   :  { %v970_v28 = vpop.f32.mrf.mxu1 }
 0x673   :  { %v979_v55 = vmul.f32 0.35355338, %v970_v28  ;;  %v982_v60 = vadd.f32 %v980_v27, %v2743_v30  ;;  %v1231_v28 = vld [vmem:[#allocation2 + $0x118] sm:$0xff] }
 0x674   :  { %2390 = vmatprep.subr.mxu1 %v1231_v28 }
 0x675   :  { %v986_v13 = vsel %vm371_vm1, %v982_v60, -inf  ;;  %v981_v3 = vadd.f32 %v979_v55, %v2749_v33  ;;  %v1099_v33 = vld [vmem:[#allocation2 + $0x120] sm:$0xff]  ;;  %v1230_v55 = vld [vmem:[#allocation2 + $0xc8] sm:$0xff]  ;;  %2391 = vmatpush3.msra.mxu1 %v1231_v28 }
 0x676   :  { %987 = vmax.xlane.f32.xlu1 %v986_v13  ;;  %2379 = vmatprep.subr.mxu0 %v1099_v33 }
 0x677   :  { %v983_v20 = vsel %vm371_vm1, %v981_v3, -inf  ;;  %2392 = vmatprep.subr.mxu1 %v1230_v55 }
 0x678   :  { %984 = vmax.xlane.f32.xlu0 %v983_v20  ;;  %2393 = vmatpush3.msra.mxu1 %v1230_v55 }
 0x6ff   :  { %v988_v29 = vpop.xlane.xlu1 %987 }
 0x700   :  { %v990_v31 = vsub.f32 %v982_v60, %v988_v29  ;;  %v1323_v60 = vld [vmem:[#allocation2 + $0x158] ss:$8 sm:$0x3] }
 0x701   :  { %v985_v7 = vpop.xlane.xlu0 %984  ;;  %v1332_v20 = vrot.slane %v1323_v60, %v104_v51  ;;  %v1229_v29 = vld [vmem:[#allocation2 + $0x78] sm:$0xff] }
 0x702   :  { %v993_v32 = vmul.f32 1.442695, %v990_v31  ;;  %v989_v34 = vsub.f32 %v981_v3, %v985_v7  ;;  %v1328_v3 = vrot.slane %v1323_v60, %v100_v49  ;;  %2394 = vmatprep.subr.mxu1 %v1229_v29 }
 0x703   :  { %2395 = vmatpush3.msra.mxu1 %v1229_v29 }
 0x704   :  { %2520 = vpow2.f32 %v993_v32  ;;  %v991_v35 = vmul.f32 1.442695, %v989_v34  ;;  %v1228_v32 = vld [vmem:[#allocation2 + $0x28] sm:$0xff] }
 0x705   :  { %2396 = vmatprep.subr.mxu1 %v1228_v32 }
 0x706   :  { %2522 = vpow2.f32 %v991_v35  ;;  %2397 = vmatpush3.msra.mxu1 %v1228_v32 }
 0x711   :  { %v2521_v36 = vpop.eup %2520 }
 0x712   :  { %v998_v37 = vsel %vm371_vm1, %v2521_v36, 0.0 }
 0x713   :  { %v2523_v30 = vpop.eup %2522  ;;  %999 = vadd.xlane.f32.xlu1 %v998_v37 }
 0x714   :  { %v995_v38 = vsel %vm371_vm1, %v2523_v30, 0.0 }
 0x715   :  { %996 = vadd.xlane.f32.xlu0 %v995_v38 }
 0x79c   :  { %v1000_v39 = vpop.xlane.xlu1 %999 }
 0x79d   :  { %2524 = vrcp.f32 %v1000_v39 }
 0x79e   :  { %v997_v40 = vpop.xlane.xlu0 %996 }
 0x79f   :  { %2526 = vrcp.f32 %v997_v40 }
 0x7aa   :  { %v2525_v41 = vpop.eup %2524 }
 0x7ab   :  { %v1004_v42 = vmul.f32 %v2525_v41, %v1000_v39 }
 0x7ac   :  { %v2527_v43 = vpop.eup %2526 }
 0x7ad   :  { %v1006_v44 = vsub.f32 2.0, %v1004_v42  ;;  %v1003_v45 = vmul.f32 %v2527_v43, %v997_v40 }
 0x7af   :  { %v1005_v46 = vsub.f32 2.0, %v1003_v45  ;;  %v1008_v47 = vmul.f32 %v2525_v41, %v1006_v44 }
 0x7b1   :  { %v1007_v50 = vmul.f32 %v2527_v43, %v1005_v46  ;;  %v1010_v53 = vmul.f32 %v2521_v36, %v1008_v47  ;;  %v2192_v47 = vld [vmem:[%s2968_s2 + $0x2] ss:$0 sm:$0xff] }
 0x7b3   :  { %v1009_v52 = vmul.f32 %v2523_v30, %v1007_v50 }
 0x7b5   :  { %2376 = vmatprep.mubr.msk.f32.mxu0 %vm371_vm1, %v1009_v52 }
 0x7b6   :  { %2377 = vmatmul.mubr.msk.f32.vlgmr.msra.gmra.mxu0 %vm371_vm1, %v1010_v53 }
 0x7b7   :  { %2380 = vmatpush3.msra.mxu0 %v1099_v33 }
 0x7b8   :  { %2381 = vmatprep.subr.mxu0 %v1098_v54 }
 0x7b9   :  { %2382 = vmatpush3.msra.mxu0 %v1098_v54 }
 0x7ba   :  { %2383 = vmatprep.subr.mxu0 %v1097_v56 }
 0x7bb   :  { %2384 = vmatpush3.msra.mxu0 %v1097_v56  ;;  %v2193_v56 = vld [vmem:[%s2968_s2 + $0x3] ss:$0 sm:$0xff] }
 0x7bc   :  { %2385 = vmatprep.subr.mxu0 %v1096_v57 }
 0x7bd   :  { %2386 = vmatpush3.msra.mxu0 %v1096_v57 }
 0x7be   :  { %1362 = vmatprep.subr.mxu0 %v1321_v58 }
 0x876   :  { %v2378_v61 = vpop.f32.mrf.mxu0 }
 0x877   :  { %v1095_v5 = vadd.f32 %v2378_v61, %v890_v25  ;;  %v1409_v61 = vld [vmem:[%s2968_s2 + $0x20] sm:$0xff] }
 0x878   :  { %v1085_v2 = vpop.f32.mrf.mxu0 }
 0x879   :  { %v1094_v4 = vadd.f32 %v1085_v2, %v889_v62  ;;  %v1410_v62 = vld [vmem:[%s2968_s2 + $0x28] sm:$0xff]  ;;  %v1507_v2 = vld [vmem:[#allocation2 + $0x138] sm:$0xff] }
 0x87b   :  { %2387 = vmatprep.mubr.msk.f32.mxu0 %vm40_vm0, %v1094_v4  ;;  %v1506_v4 = vld [vmem:[#allocation2 + $0xe8] sm:$0xff] }
 0x87c   :  { %2388 = vmatmul.mubr.msk.f32.vlgmr.msra.gmra.mxu0 %vm40_vm0, %v1095_v5  ;;  %v1505_v5 = vld [vmem:[#allocation2 + $0x98] sm:$0xff] }
 0x87d   :  { %1363 = vmatpush1.msra.mxu0 %v1320_v6  ;;  %1402 = vmatprep.mubr.f32.mxu0 %v2599_v12  ;;  %v1232_v6 = vld [vmem:[#allocation2 + $0x168] ss:$0 sm:$0xff] }
 0x87e   :  { %1364 = vmatprep.subr.mxu0 %v1319_v8 }
 0x87f   :  { %1365 = vmatpush1.msra.mxu0 %v1318_v9 }
 0x880   :  { %1366 = vmatprep.subr.mxu0 %v1317_v10 }
 0x881   :  { %1367 = vmatpush1.msra.mxu0 %v1316_v14  ;;  %v2201_v14 = vld [vmem:[%s2968_s2 + $0x6] ss:$0 sm:$0xff] }
 0x882   :  { %1368 = vmatprep.subr.mxu0 %v1315_v63 }
 0x883   :  { %1369 = vmatpush1.msra.mxu0 %v1314_v15 }
 0x884   :  { %2196 = vmatmul.mubr.msk.f32.vlgmr.msra.gmra.mxu0 %vm40_vm0, %v37_v16  ;;  %2412 = vmatprep.subr.mxu0 %v1507_v2 }
 0x885   :  { %2413 = vmatpush3.msra.mxu0 %v1507_v2 }
 0x886   :  { %2414 = vmatprep.subr.mxu0 %v1506_v4 }
 0x887   :  { %2415 = vmatpush3.msra.mxu0 %v1506_v4 }
 0x888   :  { %2416 = vmatprep.subr.mxu0 %v1505_v5 }
 0x889   :  { %2417 = vmatpush3.msra.mxu0 %v1505_v5 }
 0x93c   :  { %v2389_v24 = vpop.f32.mrf.mxu0 }
 0x93d   :  { %v1179_v19 = vadd.f32 %v2389_v24, %v1100_v18 }
 0x93e   :  { %v1173_v17 = vpop.f32.mrf.mxu0 }
 0x93f   :  { %v2825_v21 = vadd.f32 %v1179_v19, %v2639_v0  ;;  %v1174_v22 = vadd.f32 %v1173_v17, %v1100_v18 }
 0x941   :  { %v2828_v23 = vadd.f32 %v1174_v22, %v2644_v1  ;;  %v1189_v25 = vsel %vm40_vm0, %v2825_v21, 0.0  ;;  %v1193_v26 = vmul.f32 %v2825_v21, %v2825_v21 }
 0x942   :  { %1190 = vadd.xlane.f32.xlu1 %v1189_v25  ;;  %v1508_v25 = vld [vmem:[%s2968_s2 + $0x8] sm:$0xf] }
 0x943   :  { %v1186_v11 = vsel %vm40_vm0, %v2828_v23, 0.0  ;;  %v1192_v27 = vmul.f32 %v2828_v23, %v2828_v23  ;;  %v1197_v0 = vsel %vm40_vm0, %v1193_v26, 0.0 }
 0x944   :  { %1187 = vadd.xlane.f32.xlu0 %v1186_v11  ;;  %v1404_v13 = vpop.f32.mrf.mxu0 }
 0x945   :  { %v1194_v1 = vsel %vm40_vm0, %v1192_v27, 0.0  ;;  %v1405_v7 = vadd.f32 %v1404_v13, %v1328_v3 }
 0x946   :  { %1198 = vadd.xlane.f32.xlu1 %v1197_v0  ;;  %v1406_v31 = vpop.f32.mrf.mxu0 }
 0x947   :  { %v1407_v34 = vadd.f32 %v1406_v31, %v1332_v20 }
 0x948   :  { %1195 = vadd.xlane.f32.xlu0 %v1194_v1 }
 0x949   :  { %2197 = vmatprep.subr.msk.mxu1 %vm1418_vm2, %v1407_v34 }
 0x9cb   :  { %v1191_v35 = vpop.xlane.xlu1 %1190 }
 0x9cc   :  { %v1201_v49 = vmul.f32 0.03125, %v1191_v35 }
 0x9cd   :  { %v1188_v36 = vpop.xlane.xlu0 %1187 }
 0x9ce   :  { %v1200_v48 = vmul.f32 0.03125, %v1188_v36  ;;  %v1205_v37 = vmul.f32 %v1201_v49, %v1201_v49  ;;  %v1209_v44 = vsub.f32 %v2825_v21, %v1201_v49 }
 0x9cf   :  { %v1199_v51 = vpop.xlane.xlu1 %1198 }
 0x9d0   :  { %v1203_v30 = vmul.f32 0.03125, %v1199_v51  ;;  %v1204_v33 = vmul.f32 %v1200_v48, %v1200_v48  ;;  %v1208_v46 = vsub.f32 %v2828_v23, %v1200_v48 }
 0x9d1   :  { %v1196_v38 = vpop.xlane.xlu0 %1195 }
 0x9d2   :  { %v1207_v39 = vsub.f32 %v1203_v30, %v1205_v37  ;;  %v1202_v40 = vmul.f32 0.03125, %v1196_v38 }
 0x9d4   :  { %v1211_v41 = vadd.f32 1e-05, %v1207_v39  ;;  %v1206_v42 = vsub.f32 %v1202_v40, %v1204_v33 }
 0x9d6   :  { %2528 = vrsqrt.f32 %v1211_v41  ;;  %v1210_v43 = vadd.f32 1e-05, %v1206_v42 }
 0x9d8   :  { %2530 = vrsqrt.f32 %v1210_v43 }
 0x9e3   :  { %v2529_v45 = vpop.eup %2528 }
 0x9e4   :  { %v1215_v50 = vmul.f32 %v2529_v45, %v1209_v44  ;;  %v1806_v45 = vld [vmem:[#allocation2 + $0x128] sm:$0xff] }
 0x9e5   :  { %v2531_v52 = vpop.eup %2530 }
 0x9e6   :  { %v1214_v53 = vmul.f32 %v2531_v52, %v1208_v46  ;;  %v1221_v54 = vmul.f32 %v2192_v47, %v1215_v50  ;;  %v1805_v46 = vld [vmem:[#allocation2 + $0xd8] sm:$0xff] }
 0x9e7   :  { %v1803_v50 = vld [vmem:[#allocation2 + $0x38] sm:$0xff] }
 0x9e8   :  { %v1220_v57 = vmul.f32 %v2192_v47, %v1214_v53  ;;  %v1227_v59 = vadd.f32 %v2193_v56, %v1221_v54  ;;  %v1804_v47 = vld [vmem:[#allocation2 + $0x88] sm:$0xff] }
 0x9ea   :  { %v1226_v58 = vadd.f32 %v2193_v56, %v1220_v57  ;;  %v2209_v56 = vld [vmem:[%s2968_s2 + $0x7] ss:$0 sm:$0xff] }
 0x9ec   :  { %2398 = vmatprep.mubr.msk.f32.mxu1 %vm40_vm0, %v1226_v58 }
 0x9ed   :  { %2399 = vmatmul.mubr.msk.f32.vlgmr.msra.gmra.mxu1 %vm40_vm0, %v1227_v59 }
 0x9ee   :  { %2198 = vmatpush1.msk.msra.mxu1 %vm1418_vm2, %v1405_v7  ;;  %1489 = vmatprep.mubr.f32.mxu1 %v2599_v12 }
 0x9ef   :  { %2401 = vmatprep.subr.mxu1 %v1507_v2 }
 0x9f1   :  { %2199 = vmatmul.mubr.msk.f32.vlgmr.msra.gmra.mxu1 %vm1411_vm3, %v1409_v61 }
 0x9f2   :  { %1495 = vmatprep.mubr.f32.mxu1 %v2599_v12  ;;  %2402 = vmatpush3.msra.mxu1 %v1507_v2  ;;  %v1504_v12 = vld [vmem:[#allocation2 + $0x48] sm:$0xff] }
 0x9f3   :  { %2403 = vmatprep.subr.mxu1 %v1506_v4  ;;  %2418 = vmatprep.subr.mxu0 %v1504_v12 }
 0x9f4   :  { %2404 = vmatpush3.msra.mxu1 %v1506_v4  ;;  %2419 = vmatpush3.msra.mxu0 %v1504_v12 }
 0x9f5   :  { %2200 = vmatmul.mubr.msk.f32.gmra.mxu1 %vm1411_vm3, %v1410_v62  ;;  %2405 = vmatprep.subr.mxu1 %v1505_v5 }
 0x9f6   :  { %2406 = vmatpush3.msra.mxu1 %v1505_v5  ;;  %2428 = vmatprep.subr.mxu0 %v1806_v45  ;;  %v1807_v5 = vld [vmem:[#allocation2 + $0x178] ss:$0 sm:$0xff] }
 0x9f7   :  { %2407 = vmatprep.subr.mxu1 %v1504_v12 }
 0x9f8   :  { %2408 = vmatpush3.msra.mxu1 %v1504_v12 }
 0x9f9   :  { %2423 = vmatprep.subr.msk.mxu1 %vm1712_vm4, %v1508_v25 }
 0xaad   :  { %v2400_v8 = vpop.f32.mrf.mxu1 }
 0xaae   :  { %v1311_v9 = vadd.f32 %v2400_v8, %v1232_v6 }
 0xaaf   :  { %v1305_v10 = vpop.f32.mrf.mxu1 }
 0xab0   :  { %v1306_v63 = vadd.f32 %v1305_v10, %v1232_v6  ;;  %v1514_v24 = vmul.f32 %v2201_v14, %v1311_v9 }
 0xab1   :  { %v1491_v15 = vpop.f32.mrf.mxu1 }
 0xab2   :  { %v1513_v16 = vmul.f32 %v2201_v14, %v1306_v63  ;;  %v1596_v18 = vmul.f32 %v1491_v15, %v1306_v63 }
 0xab3   :  { %v2867_v19 = vpop.f32.mrf.mxu1 }
 0xab4   :  { %2409 = vmatprep.mubr.msk.f32.mxu1 %vm40_vm0, %v1513_v16  ;;  %2420 = vmatprep.mubr.msk.f32.mxu0 %vm40_vm0, %v1596_v18 }
 0xab5   :  { %v1497_v17 = vpop.f32.mrf.mxu1  ;;  %2410 = vmatmul.mubr.msk.f32.vlgmr.msra.gmra.mxu1 %vm40_vm0, %v1514_v24  ;;  %v1938_v24 = vld [vmem:[#allocation2 + $0x130] sm:$0xff] }
 0xab6   :  { %v1597_v22 = vmul.f32 %v1497_v17, %v1311_v9  ;;  %2424 = vmatpush3.msk.msra.mxu1 %vm1712_vm4, %v1508_v25  ;;  %v1936_v17 = vld [vmem:[#allocation2 + $0x90] sm:$0xff] }
 0xab7   :  { %v1499_v26 = vpop.f32.mrf.mxu1  ;;  %2439 = vmatprep.subr.mxu1 %v1938_v24 }
 0xab8   :  { %2421 = vmatmul.mubr.msk.f32.vlgmr.msra.gmra.mxu0 %vm40_vm0, %v1597_v22  ;;  %v1935_v22 = vld [vmem:[#allocation2 + $0x40] sm:$0xff] }
 0xab9   :  { %2429 = vmatpush3.msra.mxu0 %v1806_v45  ;;  %v2048_v45 = vld [vmem:[%s2970_s4 + $0x48] sm:$0xff] }
 0xaba   :  { %2430 = vmatprep.subr.mxu0 %v1805_v46 }
 0xabb   :  { %2431 = vmatpush3.msra.mxu0 %v1805_v46  ;;  %v2047_v46 = vld [vmem:[%s2970_s4 + $0x40] sm:$0xff] }
 0xabc   :  { %2432 = vmatprep.subr.mxu0 %v1804_v47 }
 0xabd   :  { %2433 = vmatpush3.msra.mxu0 %v1804_v47  ;;  %v2046_v47 = vld [vmem:[%s2970_s4 + $0x38] sm:$0xff] }
 0xabe   :  { %2434 = vmatprep.subr.mxu0 %v1803_v50 }
 0xabf   :  { %2435 = vmatpush3.msra.mxu0 %v1803_v50  ;;  %v2045_v50 = vld [vmem:[%s2970_s4 + $0x30] sm:$0xff] }
 0xb75   :  { %v2411_v11 = vpop.f32.mrf.mxu1 }
 0xb77   :  { %v1587_v1 = vpop.f32.mrf.mxu1 }
 0xb78   :  { %v2422_v27 = vpop.f32.mrf.mxu0 }
 0xb79   :  { %v1680_v0 = vmax.f32 %v2411_v11, %v2422_v27 }
 0xb7a   :  { %v1670_v28 = vpop.f32.mrf.mxu0 }
 0xb7b   :  { %v1682_v55 = vsub.f32 %v2411_v11, %v1680_v0  ;;  %v1688_v60 = vsub.f32 %v2422_v27, %v1680_v0  ;;  %v1679_v13 = vmax.f32 %v1587_v1, %v1670_v28 }
 0xb7d   :  { %v1685_v3 = vmul.f32 1.442695, %v1682_v55  ;;  %v1691_v20 = vmul.f32 1.442695, %v1688_v60  ;;  %v1681_v29 = vsub.f32 %v1587_v1, %v1679_v13  ;;  %v1687_v31 = vsub.f32 %v1670_v28, %v1679_v13 }
 0xb7f   :  { %2532 = vpow2.f32 %v1685_v3  ;;  %v1683_v7 = vmul.f32 1.442695, %v1681_v29  ;;  %v1689_v32 = vmul.f32 1.442695, %v1687_v31 }
 0xb80   :  { %2534 = vpow2.f32 %v1691_v20 }
 0xb81   :  { %2536 = vpow2.f32 %v1683_v7 }
 0xb82   :  { %2538 = vpow2.f32 %v1689_v32 }
 0xb8c   :  { %v2533_v34 = vpop.eup %2532 }
 0xb8d   :  { %v2535_v35 = vpop.eup %2534 }
 0xb8e   :  { %v2537_v49 = vpop.eup %2536  ;;  %v1694_v36 = vadd.f32 %v2535_v35, %v2533_v34  ;;  %v2212_v35 = vld [vmem:[%s2968_s2 + $0x4] ss:$0 sm:$0xff] }
 0xb8f   :  { %v2539_v48 = vpop.eup %2538 }
 0xb90   :  { %2540 = vrcp.f32 %v1694_v36  ;;  %v1693_v51 = vadd.f32 %v2539_v48, %v2537_v49 }
 0xb92   :  { %2542 = vrcp.f32 %v1693_v51 }
 0xb9d   :  { %v2541_v37 = vpop.eup %2540 }
 0xb9e   :  { %v1698_v30 = vmul.f32 %v2541_v37, %v1694_v36 }
 0xb9f   :  { %v2543_v38 = vpop.eup %2542 }
 0xba0   :  { %v1697_v33 = vmul.f32 %v2543_v38, %v1693_v51  ;;  %v1700_v39 = vsub.f32 2.0, %v1698_v30 }
 0xba2   :  { %v1699_v40 = vsub.f32 2.0, %v1697_v33  ;;  %v1702_v41 = vmul.f32 %v2541_v37, %v1700_v39  ;;  %v2213_v37 = vld [vmem:[%s2968_s2 + $0x5] ss:$0 sm:$0xff]  ;;  %v2054_v39 = vld [vmem:[%s2970_s4 + $0x78] sm:$0xff] }
 0xba3   :  { %2450 = vmatprep.subr.mxu0 %v2054_v39 }
 0xba4   :  { %v1701_v42 = vmul.f32 %v2543_v38, %v1699_v40  ;;  %v1704_v44 = vmul.f32 %v2533_v34, %v1702_v41  ;;  %v2053_v40 = vld [vmem:[%s2970_s4 + $0x70] sm:$0xff]  ;;  %v2052_v41 = vld [vmem:[%s2970_s4 + $0x68] sm:$0xff] }
 0xba6   :  { %v1703_v43 = vmul.f32 %v2537_v49, %v1701_v42  ;;  %v2051_v42 = vld [vmem:[%s2970_s4 + $0x60] sm:$0xff] }
 0xba8   :  { %2425 = vmatprep.mubr.msk.f32.mxu1 %vm1705_vm5, %v1703_v43  ;;  %v2050_v43 = vld [vmem:[%s2970_s4 + $0x58] sm:$0xff] }
 0xba9   :  { %2426 = vmatmul.mubr.msk.f32.vlgmr.msra.gmra.mxu1 %vm1705_vm5, %v1704_v44  ;;  %v2049_v44 = vld [vmem:[%s2970_s4 + $0x50] sm:$0xff] }
 0xbaa   :  { %2440 = vmatpush3.msra.mxu1 %v1938_v24 }
 0xc69   :  { %v2427_v52 = vpop.f32.mrf.mxu1 }
 0xc6a   :  { %v1792_v53 = vsub.f32 1.0, %v2427_v52  ;;  %v1798_v62 = vmul.f32 %v2427_v52, %v2209_v56  ;;  %v2044_v52 = vld [vmem:[%s2970_s4 + $0x28] sm:$0xff] }
 0xc6b   :  { %v1782_v54 = vpop.f32.mrf.mxu1 }
 0xc6c   :  { %v1791_v57 = vsub.f32 1.0, %v1782_v54  ;;  %v1800_v58 = vmul.f32 %v1792_v53, %v1499_v26  ;;  %v1797_v59 = vmul.f32 %v2209_v56, %v1782_v54  ;;  %v2043_v53 = vld [vmem:[%s2970_s4 + $0x20] sm:$0xff]  ;;  %v2042_v54 = vld [vmem:[%s2970_s4 + $0x18] sm:$0xff]  ;;  %v2041_v56 = vld [vmem:[%s2970_s4 + $0x10] sm:$0xff] }
 0xc6e   :  { %v1799_v61 = vmul.f32 %v1791_v57, %v2867_v19  ;;  %v1802_v4 = vadd.f32 %v1800_v58, %v1798_v62  ;;  %v1937_v19 = vld [vmem:[#allocation2 + $0xe0] sm:$0xff]  ;;  %v2040_v57 = vld [vmem:[%s2970_s4 + $0x8] sm:$0xff] }
 0xc6f   :  { %2441 = vmatprep.subr.mxu1 %v1937_v19  ;;  %v2039_v58 = vld [vmem:[%s2970_s4] sm:$0xff] }
 0xc70   :  { %v1801_v2 = vadd.f32 %v1799_v61, %v1797_v59  ;;  %2442 = vmatpush3.msra.mxu1 %v1937_v19  ;;  %v1939_v59 = vld [vmem:[#allocation2 + $0x180] ss:$0 sm:$0xff] }
 0xc71   :  { %2443 = vmatprep.subr.mxu1 %v1936_v17 }
 0xc72   :  { %2436 = vmatprep.mubr.msk.f32.mxu0 %vm40_vm0, %v1801_v2  ;;  %2444 = vmatpush3.msra.mxu1 %v1936_v17 }
 0xc73   :  { %2437 = vmatmul.mubr.msk.f32.vlgmr.msra.gmra.mxu0 %vm40_vm0, %v1802_v4  ;;  %2445 = vmatprep.subr.mxu1 %v1935_v22 }
 0xc74   :  { %2446 = vmatpush3.msra.mxu1 %v1935_v22  ;;  %2451 = vmatpush3.msra.mxu0 %v2054_v39 }
 0xc75   :  { %2452 = vmatprep.subr.mxu0 %v2053_v40 }
 0xc76   :  { %2453 = vmatpush3.msra.mxu0 %v2053_v40 }
 0xc77   :  { %2454 = vmatprep.subr.mxu0 %v2052_v41 }
 0xc78   :  { %2455 = vmatpush3.msra.mxu0 %v2052_v41 }
 0xc79   :  { %2456 = vmatprep.subr.mxu0 %v2051_v42 }
 0xc7a   :  { %2457 = vmatpush3.msra.mxu0 %v2051_v42 }
 0xc7b   :  { %2458 = vmatprep.subr.mxu0 %v2050_v43 }
 0xc7c   :  { %2459 = vmatpush3.msra.mxu0 %v2050_v43 }
 0xc7d   :  { %2460 = vmatprep.subr.mxu0 %v2049_v44 }
 0xc7e   :  { %2461 = vmatpush3.msra.mxu0 %v2049_v44 }
 0xc7f   :  { %2462 = vmatprep.subr.mxu0 %v2048_v45 }
 0xc80   :  { %2463 = vmatpush3.msra.mxu0 %v2048_v45 }
 0xc81   :  { %2464 = vmatprep.subr.mxu0 %v2047_v46 }
 0xc82   :  { %2465 = vmatpush3.msra.mxu0 %v2047_v46 }
 0xc83   :  { %2466 = vmatprep.subr.mxu0 %v2046_v47 }
 0xc84   :  { %2467 = vmatpush3.msra.mxu0 %v2046_v47 }
 0xc85   :  { %2468 = vmatprep.subr.mxu0 %v2045_v50 }
 0xc86   :  { %2469 = vmatpush3.msra.mxu0 %v2045_v50 }
 0xc87   :  { %2470 = vmatprep.subr.mxu0 %v2044_v52 }
 0xc88   :  { %2471 = vmatpush3.msra.mxu0 %v2044_v52 }
 0xc89   :  { %2472 = vmatprep.subr.mxu0 %v2043_v53 }
 0xc8a   :  { %2473 = vmatpush3.msra.mxu0 %v2043_v53 }
 0xc8b   :  { %2474 = vmatprep.subr.mxu0 %v2042_v54 }
 0xc8c   :  { %2475 = vmatpush3.msra.mxu0 %v2042_v54 }
 0xc8d   :  { %2476 = vmatprep.subr.mxu0 %v2041_v56 }
 0xc8e   :  { %2477 = vmatpush3.msra.mxu0 %v2041_v56 }
 0xc8f   :  { %2478 = vmatprep.subr.mxu0 %v2040_v57 }
 0xc90   :  { %2479 = vmatpush3.msra.mxu0 %v2040_v57 }
 0xc91   :  { %2480 = vmatprep.subr.mxu0 %v2039_v58 }
 0xc92   :  { %2481 = vmatpush3.msra.mxu0 %v2039_v58 }
 0xd33   :  { %v2438_v12 = vpop.f32.mrf.mxu0 }
 0xd34   :  { %v1886_v6 = vadd.f32 %v2438_v12, %v1807_v5 }
 0xd35   :  { %v1880_v8 = vpop.f32.mrf.mxu0 }
 0xd36   :  { %v2883_v9 = vadd.f32 %v1886_v6, %v2825_v21  ;;  %v1881_v10 = vadd.f32 %v1880_v8, %v1807_v5 }
 0xd38   :  { %v2886_v14 = vadd.f32 %v1881_v10, %v2828_v23  ;;  %v1896_v63 = vsel %vm40_vm0, %v2883_v9, 0.0  ;;  %v1900_v15 = vmul.f32 %v2883_v9, %v2883_v9 }
 0xd39   :  { %1897 = vadd.xlane.f32.xlu1 %v1896_v63 }
 0xd3a   :  { %v1893_v16 = vsel %vm40_vm0, %v2886_v14, 0.0  ;;  %v1899_v18 = vmul.f32 %v2886_v14, %v2886_v14  ;;  %v1904_v21 = vsel %vm40_vm0, %v1900_v15, 0.0 }
 0xd3b   :  { %1894 = vadd.xlane.f32.xlu0 %v1893_v16 }
 0xd3c   :  { %v1901_v23 = vsel %vm40_vm0, %v1899_v18, 0.0 }
 0xd3d   :  { %1905 = vadd.xlane.f32.xlu1 %v1904_v21 }
 0xd3f   :  { %1902 = vadd.xlane.f32.xlu0 %v1901_v23 }
 0xdc2   :  { %v1898_v25 = vpop.xlane.xlu1 %1897 }
 0xdc3   :  { %v1908_v26 = vmul.f32 0.03125, %v1898_v25 }
 0xdc4   :  { %v1895_v11 = vpop.xlane.xlu0 %1894 }
 0xdc5   :  { %v1907_v27 = vmul.f32 0.03125, %v1895_v11  ;;  %v1912_v1 = vmul.f32 %v1908_v26, %v1908_v26  ;;  %v1916_v7 = vsub.f32 %v2883_v9, %v1908_v26 }
 0xdc6   :  { %v1906_v0 = vpop.xlane.xlu1 %1905 }
 0xdc7   :  { %v1910_v28 = vmul.f32 0.03125, %v1906_v0  ;;  %v1911_v60 = vmul.f32 %v1907_v27, %v1907_v27  ;;  %v1915_v34 = vsub.f32 %v2886_v14, %v1907_v27  ;;  %v2216_v27 = vld [vmem:[%s2968_s2 + $0xc] ss:$0 sm:$0xff] }
 0xdc8   :  { %v1903_v55 = vpop.xlane.xlu0 %1902 }
 0xdc9   :  { %v1914_v13 = vsub.f32 %v1910_v28, %v1912_v1  ;;  %v1909_v3 = vmul.f32 0.03125, %v1903_v55 }
 0xdcb   :  { %v1918_v20 = vadd.f32 1e-05, %v1914_v13  ;;  %v1913_v29 = vsub.f32 %v1909_v3, %v1911_v60 }
 0xdcd   :  { %2544 = vrsqrt.f32 %v1918_v20  ;;  %v1917_v31 = vadd.f32 1e-05, %v1913_v29 }
 0xdcf   :  { %2546 = vrsqrt.f32 %v1917_v31 }
 0xdda   :  { %v2545_v32 = vpop.eup %2544 }
 0xddb   :  { %v1922_v49 = vmul.f32 %v2545_v32, %v1916_v7 }
 0xddc   :  { %v2547_v36 = vpop.eup %2546 }
 0xddd   :  { %v1921_v48 = vmul.f32 %v2547_v36, %v1915_v34  ;;  %v1928_v51 = vmul.f32 %v2212_v35, %v1922_v49 }
 0xddf   :  { %v1927_v30 = vmul.f32 %v2212_v35, %v1921_v48  ;;  %v1934_v33 = vadd.f32 %v2213_v37, %v1928_v51 }
 0xde1   :  { %v1933_v38 = vadd.f32 %v2213_v37, %v1927_v30 }
 0xde3   :  { %2447 = vmatprep.mubr.msk.f32.mxu1 %vm40_vm0, %v1933_v38 }
 0xde4   :  { %2448 = vmatmul.mubr.msk.f32.vlgmr.msra.gmra.mxu1 %vm40_vm0, %v1934_v33 }
 0xea4   :  { %v2449_v61 = vpop.f32.mrf.mxu1 }
 0xea5   :  { %v2018_v62 = vadd.f32 %v2449_v61, %v1939_v59 }
 0xea6   :  { %v2012_v2 = vpop.f32.mrf.mxu1 }
 0xea7   :  { %v2024_v4 = vmul.f32 0.044715, %v2018_v62  ;;  %v2013_v5 = vadd.f32 %v2012_v2, %v1939_v59  ;;  %v2022_v25 = vmul.f32 0.5, %v2018_v62 }
 0xea9   :  { %v2026_v12 = vmul.f32 %v2024_v4, %v2018_v62  ;;  %v2023_v6 = vmul.f32 0.044715, %v2013_v5  ;;  %v2021_v17 = vmul.f32 0.5, %v2013_v5 }
 0xeab   :  { %v2028_v8 = vmul.f32 %v2026_v12, %v2018_v62  ;;  %v2025_v10 = vmul.f32 %v2023_v6, %v2013_v5 }
 0xead   :  { %v2030_v63 = vadd.f32 %v2028_v8, %v2018_v62  ;;  %v2027_v15 = vmul.f32 %v2025_v10, %v2013_v5 }
 0xeaf   :  { %v2029_v16 = vadd.f32 %v2027_v15, %v2013_v5  ;;  %v2032_v18 = vmul.f32 0.7978846, %v2030_v63 }
 0xeb1   :  { %v2031_v21 = vmul.f32 0.7978846, %v2029_v16  ;;  %2548 = vtanh.f32 %v2032_v18 }
 0xeb3   :  { %2550 = vtanh.f32 %v2031_v21 }
 0xebe   :  { %v2549_v23 = vpop.eup %2548 }
 0xebf   :  { %v2036_v19 = vadd.f32 1.0, %v2549_v23 }
 0xec0   :  { %v2551_v24 = vpop.eup %2550 }
 0xec1   :  { %v2035_v22 = vadd.f32 1.0, %v2551_v24  ;;  %v2038_v11 = vmul.f32 %v2036_v19, %v2022_v25 }
 0xec3   :  { %v2037_v26 = vmul.f32 %v2035_v22, %v2021_v17 }
 0xec5   :  { %2482 = vmatprep.mubr.f32.mxu0 %v2037_v26 }
 0xec6   :  { %2483 = vmatmul.mubr.f32.vlgmr.msra.gmra.mxu0 %v2038_v11 }
 0xf86   :  { %v2484_v0 = vpop.f32.mrf.mxu0 }
 0xf87   :  { %v2132_v1 = vadd.f32 %v2484_v0, %v2216_v27 }
 0xf88   :  { %v2126_v28 = vpop.f32.mrf.mxu0 }
 0xf89   :  { %v2136_v55 = vadd.f32 %v2132_v1, %v2883_v9  ;;  %v2127_v60 = vadd.f32 %v2216_v27, %v2126_v28 }
 0xf8b   :  { %2138 = vst.msk [vmem:[#allocation5 + $0x8] sm:$0xff] %vm40_vm0, %v2136_v55  ;;  %v2135_v13 = vadd.f32 %v2127_v60, %v2886_v14 }
 0xf8d   :  { %2137 = vst.msk [vmem:[#allocation5] sm:$0xff] %vm40_vm0, %v2135_v13 }
 0xf8e   :  { %2583 = shalt.err (!%p2580_p9)
}
 0xf8f   :  { %s2601_s2 = smov 128   ;;  %s2602_s18 = smov 8  }
 0xf90   :  { %2150 = dma.vmem_to_hbm [thread:$0]  %s2145_s16, 256, %s2971_s5, [#allocation4], %s2601_s2, %s2601_s2, %s2602_s18  }
 0xf91   :  { %2594 = dma.done.wait [#allocation4], 256  }
 0xf92   :  { %2595 = vsyncadd [#allocation4], 4294967040 }
 0xf93   :  { %2154 = vsyncpa [#allocation3], 1 }
 0xf94   :  { %2155 = vsyncpa [#allocation4], 1 }

</bundles_post_ra>
